<compile_context>
chip_gen: v7x
topology: tpu7x:2x2x1
jax: 0.10.0
libtpu: 0.0.40
codegen_flags: <defaults>
</compile_context>

<pallas_src>
import functools
import math

import jax
import jax.numpy as jnp
from jax import lax
from jax.experimental import pallas as pl
from jax.experimental.pallas import tpu as pltpu


def encoder_layer_kernel(
    x_q_ref,            # (1, TQ, H) f32 — query rows for this tile (residual source)
    x_kv_ref,           # (1, S,  H) f32 — full sequence (K/V side)
    wq_ref, bq_ref,     # (H, H) bf16, (1, H) f32
    wkv_ref, bkv_ref,   # (H, 2H) bf16, (1, 2H) f32    fused Wk|Wv
    wo_ref, bo_ref,     # (H, H) bf16, (1, H) f32
    g1_ref, be1_ref,    # (1, H) f32, (1, H) f32       LayerNorm1 gamma/beta
    w1_ref, b1_ref,     # (H, F) bf16, (1, F) f32
    w2_ref, b2_ref,     # (F, H) bf16, (1, H) f32
    g2_ref, be2_ref,    # (1, H) f32, (1, H) f32       LayerNorm2 gamma/beta
    o_ref,              # (1, TQ, H)
    *, num_heads: int, head_dim: int, ff_chunk: int,
):
    eps = 1e-5
    H = num_heads * head_dim
    TQ = x_q_ref.shape[1]
    S = x_kv_ref.shape[1]
    F = w1_ref.shape[1]

    x_q = x_q_ref[0].astype(jnp.float32)              # (TQ, H) f32, kept for residual
    x_q_bf = x_q.astype(jnp.bfloat16)
    x_kv_bf = x_kv_ref[0].astype(jnp.bfloat16)        # (S, H)

    # ---- projections: bf16 MXU inputs, f32 accumulation ------------------
    q = jnp.dot(x_q_bf, wq_ref[...],
                preferred_element_type=jnp.float32) + bq_ref[...]        # (TQ, H)
    kv = jnp.dot(x_kv_bf, wkv_ref[...],
                 preferred_element_type=jnp.float32) + bkv_ref[...]      # (S, 2H)
    k = kv[:, :H]                                                        # (S, H)
    v = kv[:, H:]                                                        # (S, H)

    # ---- multi-head attention: batched over heads, no explicit transposes -
    scale = 1.0 / math.sqrt(head_dim)
    q3 = q.reshape(TQ, num_heads, head_dim).astype(jnp.bfloat16)
    k3 = k.reshape(S, num_heads, head_dim).astype(jnp.bfloat16)
    v3 = v.reshape(S, num_heads, head_dim).astype(jnp.bfloat16)

    energy = jnp.einsum("qhd,khd->hqk", q3, k3,
                        preferred_element_type=jnp.float32) * scale      # (nh, TQ, S)
    # TODO(synk): mask path (masked_fill) omitted — layer is always called with mask=None.
    m = jnp.max(energy, axis=-1, keepdims=True)
    p = jnp.exp(energy - m)
    inv = pl.reciprocal(jnp.sum(p, axis=-1, keepdims=True), approx=True)
    attn = (p * inv).astype(jnp.bfloat16)                                # (nh, TQ, S)

    ctx = jnp.einsum("hqk,khd->qhd", attn, v3,
                     preferred_element_type=jnp.float32).reshape(TQ, H)  # (TQ, H)
    att_out = jnp.dot(ctx.astype(jnp.bfloat16), wo_ref[...],
                      preferred_element_type=jnp.float32) + bo_ref[...]

    # ---- residual + LayerNorm 1 (f32) ------------------------------------
    r1 = x_q + att_out
    mu1 = jnp.mean(r1, axis=-1, keepdims=True)
    var1 = jnp.mean(jnp.square(r1 - mu1), axis=-1, keepdims=True)
    n1 = (r1 - mu1) * lax.rsqrt(var1 + eps)
    n1 = n1 * g1_ref[...] + be1_ref[...]

    # ---- pointwise feed-forward, chunked over the ff dimension ------------
    n1_bf = n1.astype(jnp.bfloat16)
    ff = jnp.zeros((TQ, H), jnp.float32)
    for c in range(F // ff_chunk):                     # static chunking; 1 iter at demo F
        lo = c * ff_chunk
        h = jnp.dot(n1_bf, w1_ref[:, lo:lo + ff_chunk],
                    preferred_element_type=jnp.float32) + b1_ref[:, lo:lo + ff_chunk]
        h = jnp.maximum(h, 0.0).astype(jnp.bfloat16)
        ff = ff + jnp.dot(h, w2_ref[lo:lo + ff_chunk, :],
                          preferred_element_type=jnp.float32)
    ff = ff + b2_ref[...]

    # ---- residual + LayerNorm 2 (f32) ------------------------------------
    r2 = n1 + ff
    mu2 = jnp.mean(r2, axis=-1, keepdims=True)
    var2 = jnp.mean(jnp.square(r2 - mu2), axis=-1, keepdims=True)
    n2 = (r2 - mu2) * lax.rsqrt(var2 + eps)
    n2 = n2 * g2_ref[...] + be2_ref[...]

    o_ref[0] = n2.astype(o_ref.dtype)


def encoder_transformer_layer(x, params, *, num_heads, q_tile=None, ff_chunk=None):
    """x: (B, S, H) float32. params: dict of (in, out)-transposed f32 weights."""
    B, S, H = x.shape
    F = params["w1"].shape[1]
    assert H % num_heads == 0, "hidden_size must be divisible by num_heads"
    assert params["wq"].shape == (H, H) and params["w2"].shape == (F, H)
    head_dim = H // num_heads

    if q_tile is None:
        q_tile = S if S <= 128 else 128
    assert S % q_tile == 0, "seq length must be divisible by the query tile"
    if ff_chunk is None:
        ff_chunk = F if F <= 1024 else 1024
    assert F % ff_chunk == 0, "ff_size must be divisible by the ff chunk"

    # Big weight matrices in bf16 (MXU-native, halves weight VMEM); biases and
    # LayerNorm params stay f32.  K/V weights fused into one (H, 2H) matmul.
    bf = lambda w: w.astype(jnp.bfloat16)
    wq = bf(params["wq"])
    wkv = bf(jnp.concatenate([params["wk"], params["wv"]], axis=1))      # (H, 2H)
    bkv = jnp.concatenate([params["bk"], params["bv"]], axis=1)          # (1, 2H)
    wo = bf(params["wo"])
    w1 = bf(params["w1"])
    w2 = bf(params["w2"])

    def full_spec(shape):
        nd = len(shape)
        return pl.BlockSpec(shape, lambda b, s, _nd=nd: (0,) * _nd)

    kernel = functools.partial(
        encoder_layer_kernel, num_heads=num_heads, head_dim=head_dim,
        ff_chunk=ff_chunk,
    )

    in_specs = [
        pl.BlockSpec((1, q_tile, H), lambda b, s: (b, s, 0)),   # x (query rows)
        pl.BlockSpec((1, S, H), lambda b, s: (b, 0, 0)),        # x (full sequence for K/V)
        full_spec((H, H)), full_spec((1, H)),                   # Wq, bq
        full_spec((H, 2 * H)), full_spec((1, 2 * H)),           # Wkv, bkv
        full_spec((H, H)), full_spec((1, H)),                   # Wo, bo
        full_spec((1, H)), full_spec((1, H)),                   # LN1 gamma, beta
        full_spec((H, F)), full_spec((1, F)),                   # W1, b1
        full_spec((F, H)), full_spec((1, H)),                   # W2, b2
        full_spec((1, H)), full_spec((1, H)),                   # LN2 gamma, beta
    ]

    # VMEM budget: bf16 weights + f32 small params + double-buffered x/out
    # tiles + the largest live f32 activations, with headroom; clamp to the
    # v7x-safe 64 MiB ceiling.
    weight_bytes = 2 * (H * H + H * 2 * H + H * H + H * F + F * H)
    small_bytes = 4 * (H + 2 * H + H + 2 * H + F + H + 2 * H)
    io_bytes = 4 * 2 * 2 * (q_tile * H + S * H + q_tile * H)    # 2x double-buffered
    act_bytes = 4 * (S * 2 * H + 6 * q_tile * H
                     + 2 * num_heads * q_tile * S + 2 * q_tile * ff_chunk)
    vmem_limit = int(min(max(weight_bytes + small_bytes + io_bytes + act_bytes
                             + (16 << 20), 32 << 20), 64 << 20))

    return pl.pallas_call(
        kernel,
        out_shape=jax.ShapeDtypeStruct((B, S, H), x.dtype),
        grid_spec=pltpu.PrefetchScalarGridSpec(
            num_scalar_prefetch=0,
            grid=(B, S // q_tile),
            in_specs=in_specs,
            out_specs=pl.BlockSpec((1, q_tile, H), lambda b, s: (b, s, 0)),
        ),
        compiler_params=pltpu.CompilerParams(
            dimension_semantics=("parallel", "parallel"),
            vmem_limit_bytes=vmem_limit,
        ),
    )(
        x, x,
        wq, params["bq"],
        wkv, bkv,
        wo, params["bo"],
        params["ln1_g"], params["ln1_b"],
        w1, params["b1"],
        w2, params["b2"],
        params["ln2_g"], params["ln2_b"],
    )


def init_params(key, hidden_size, ff_size):
    """Deterministic synthetic params. Linear weights stored as (in, out)."""
    ks = jax.random.split(key, 12)
    s = 0.02

    def w(k, shape):
        return jax.random.normal(k, shape, jnp.float32) * s

    return {
        "wq": w(ks[0], (hidden_size, hidden_size)), "bq": w(ks[1], (1, hidden_size)),
        "wk": w(ks[2], (hidden_size, hidden_size)), "bk": w(ks[3], (1, hidden_size)),
        "wv": w(ks[4], (hidden_size, hidden_size)), "bv": w(ks[5], (1, hidden_size)),
        "wo": w(ks[6], (hidden_size, hidden_size)), "bo": w(ks[7], (1, hidden_size)),
        "ln1_g": jnp.ones((1, hidden_size), jnp.float32),
        "ln1_b": jnp.zeros((1, hidden_size), jnp.float32),
        "w1": w(ks[8], (hidden_size, ff_size)), "b1": w(ks[9], (1, ff_size)),
        "w2": w(ks[10], (ff_size, hidden_size)), "b2": w(ks[11], (1, hidden_size)),
        "ln2_g": jnp.ones((1, hidden_size), jnp.float32),
        "ln2_b": jnp.zeros((1, hidden_size), jnp.float32),
    }


def reference_forward(x, params, *, num_heads):
    """Plain-JAX f32 reference mirroring the PyTorch forward (eval mode)."""
    B, S, H = x.shape
    hd = H // num_heads

    def lin(v, w, b):
        return v @ w + b

    q = lin(x, params["wq"], params["bq"]).reshape(B, S, num_heads, hd).transpose(0, 2, 1, 3)
    k = lin(x, params["wk"], params["bk"]).reshape(B, S, num_heads, hd).transpose(0, 2, 1, 3)
    v = lin(x, params["wv"], params["bv"]).reshape(B, S, num_heads, hd).transpose(0, 2, 1, 3)
    e = jnp.einsum("bhqd,bhkd->bhqk", q, k) / math.sqrt(hd)
    a = jax.nn.softmax(e, axis=-1)
    o = jnp.einsum("bhqk,bhkd->bhqd", a, v).transpose(0, 2, 1, 3).reshape(B, S, H)
    att = lin(o, params["wo"], params["bo"])

    def ln(v, g, b):
        mu = v.mean(-1, keepdims=True)
        var = ((v - mu) ** 2).mean(-1, keepdims=True)
        return (v - mu) / jnp.sqrt(var + 1e-5) * g + b

    x1 = ln(x + att, params["ln1_g"], params["ln1_b"])
    ff = lin(jnp.maximum(lin(x1, params["w1"], params["b1"]), 0.0),
             params["w2"], params["b2"])
    return ln(x1 + ff, params["ln2_g"], params["ln2_b"])


if __name__ == "__main__":
    batch, seq, hidden, num_heads, ff_size = 2, 8, 32, 4, 64
    key = jax.random.PRNGKey(0)
    kx, kp = jax.random.split(key)

    x = jax.random.normal(kx, (batch, seq, hidden), jnp.float32)
    params = init_params(kp, hidden, ff_size)

    out = encoder_transformer_layer(x, params, num_heads=num_heads)
    out = jax.block_until_ready(out)

    ref = reference_forward(x, params, num_heads=num_heads)
    assert out.shape == (batch, seq, hidden)
    # bf16 MXU inputs + approx reciprocal vs an f32 reference → relaxed tolerance.
    assert jnp.allclose(out, ref, atol=2e-2, rtol=2e-2), "mismatch vs reference"

    print("KERNEL_OK")
</pallas_src>

<mosaic_0001>
module attributes {stable_mosaic.version = 11 : i64} {
  func.func @encoder_layer_kernel(%arg0: i32, %arg1: i32, %arg2: memref<1x8x32xf32, #tpu.memory_space<vmem>>, %arg3: memref<1x8x32xf32, #tpu.memory_space<vmem>>, %arg4: memref<32x32xbf16, #tpu.memory_space<vmem>>, %arg5: memref<1x32xf32, #tpu.memory_space<vmem>>, %arg6: memref<32x64xbf16, #tpu.memory_space<vmem>>, %arg7: memref<1x64xf32, #tpu.memory_space<vmem>>, %arg8: memref<32x32xbf16, #tpu.memory_space<vmem>>, %arg9: memref<1x32xf32, #tpu.memory_space<vmem>>, %arg10: memref<1x32xf32, #tpu.memory_space<vmem>>, %arg11: memref<1x32xf32, #tpu.memory_space<vmem>>, %arg12: memref<32x64xbf16, #tpu.memory_space<vmem>>, %arg13: memref<1x64xf32, #tpu.memory_space<vmem>>, %arg14: memref<64x32xbf16, #tpu.memory_space<vmem>>, %arg15: memref<1x32xf32, #tpu.memory_space<vmem>>, %arg16: memref<1x32xf32, #tpu.memory_space<vmem>>, %arg17: memref<1x32xf32, #tpu.memory_space<vmem>>, %arg18: memref<1x8x32xf32, #tpu.memory_space<vmem>>) attributes {dimension_semantics = [#tpu.dimension_semantics<parallel>, #tpu.dimension_semantics<parallel>], iteration_bounds = array<i64: 2, 1>, scalar_prefetch = 0 : i64, scratch_operands = 0 : i64, tpu.core_type = #tpu.core_type<tc>, window_params = [{transform_indices = @transform_0, window_bounds = array<i64: 1, 8, 32>}, {transform_indices = @transform_1, window_bounds = array<i64: 1, 8, 32>}, {pipeline_mode = #tpu.pipeline_mode<synchronous>, transform_indices = @transform_2, window_bounds = array<i64: 32, 32>}, {pipeline_mode = #tpu.pipeline_mode<synchronous>, transform_indices = @transform_3, window_bounds = array<i64: 1, 32>}, {pipeline_mode = #tpu.pipeline_mode<synchronous>, transform_indices = @transform_4, window_bounds = array<i64: 32, 64>}, {pipeline_mode = #tpu.pipeline_mode<synchronous>, transform_indices = @transform_5, window_bounds = array<i64: 1, 64>}, {pipeline_mode = #tpu.pipeline_mode<synchronous>, transform_indices = @transform_6, window_bounds = array<i64: 32, 32>}, {pipeline_mode = #tpu.pipeline_mode<synchronous>, transform_indices = @transform_7, window_bounds = array<i64: 1, 32>}, {pipeline_mode = #tpu.pipeline_mode<synchronous>, transform_indices = @transform_8, window_bounds = array<i64: 1, 32>}, {pipeline_mode = #tpu.pipeline_mode<synchronous>, transform_indices = @transform_9, window_bounds = array<i64: 1, 32>}, {pipeline_mode = #tpu.pipeline_mode<synchronous>, transform_indices = @transform_10, window_bounds = array<i64: 32, 64>}, {pipeline_mode = #tpu.pipeline_mode<synchronous>, transform_indices = @transform_11, window_bounds = array<i64: 1, 64>}, {pipeline_mode = #tpu.pipeline_mode<synchronous>, transform_indices = @transform_12, window_bounds = array<i64: 64, 32>}, {pipeline_mode = #tpu.pipeline_mode<synchronous>, transform_indices = @transform_13, window_bounds = array<i64: 1, 32>}, {pipeline_mode = #tpu.pipeline_mode<synchronous>, transform_indices = @transform_14, window_bounds = array<i64: 1, 32>}, {pipeline_mode = #tpu.pipeline_mode<synchronous>, transform_indices = @transform_15, window_bounds = array<i64: 1, 32>}, {transform_indices = @transform_16, window_bounds = array<i64: 1, 8, 32>}]} {
    %c0 = arith.constant 0 : index
    %c0_0 = arith.constant 0 : index
    %c0_1 = arith.constant 0 : index
    %0 = vector.load %arg2[%c0, %c0_0, %c0_1] : memref<1x8x32xf32, #tpu.memory_space<vmem>>, vector<1x8x32xf32>
    %1 = vector.shape_cast %0 : vector<1x8x32xf32> to vector<8x32xf32>
    %2 = arith.truncf %1 : vector<8x32xf32> to vector<8x32xbf16>
    %c0_2 = arith.constant 0 : index
    %c0_3 = arith.constant 0 : index
    %c0_4 = arith.constant 0 : index
    %3 = vector.load %arg3[%c0_2, %c0_3, %c0_4] : memref<1x8x32xf32, #tpu.memory_space<vmem>>, vector<1x8x32xf32>
    %4 = vector.shape_cast %3 : vector<1x8x32xf32> to vector<8x32xf32>
    %5 = arith.truncf %4 : vector<8x32xf32> to vector<8x32xbf16>
    %c0_5 = arith.constant 0 : index
    %c0_6 = arith.constant 0 : index
    %6 = vector.load %arg4[%c0_5, %c0_6] : memref<32x32xbf16, #tpu.memory_space<vmem>>, vector<32x32xbf16>
    %cst = arith.constant dense<0.000000e+00> : vector<8x32xf32>
    %7 = tpu.matmul %2, %6, %cst {dimension_numbers = #tpu.dot_dimension_numbers<[1], [0], [0], [1], [0, 0, 1, 1], [], []>} : vector<8x32xbf16>, vector<32x32xbf16>, vector<8x32xf32> -> vector<8x32xf32>
    %c0_7 = arith.constant 0 : index
    %c0_8 = arith.constant 0 : index
    %8 = vector.load %arg5[%c0_7, %c0_8] : memref<1x32xf32, #tpu.memory_space<vmem>>, vector<1x32xf32>
    %9 = vector.broadcast %8 : vector<1x32xf32> to vector<8x32xf32>
    %10 = arith.addf %7, %9 : vector<8x32xf32>
    %c0_9 = arith.constant 0 : index
    %c0_10 = arith.constant 0 : index
    %11 = vector.load %arg6[%c0_9, %c0_10] : memref<32x64xbf16, #tpu.memory_space<vmem>>, vector<32x64xbf16>
    %cst_11 = arith.constant dense<0.000000e+00> : vector<8x64xf32>
    %12 = tpu.matmul %5, %11, %cst_11 {dimension_numbers = #tpu.dot_dimension_numbers<[1], [0], [0], [1], [0, 0, 1, 1], [], []>} : vector<8x32xbf16>, vector<32x64xbf16>, vector<8x64xf32> -> vector<8x64xf32>
    %c0_12 = arith.constant 0 : index
    %c0_13 = arith.constant 0 : index
    %13 = vector.load %arg7[%c0_12, %c0_13] : memref<1x64xf32, #tpu.memory_space<vmem>>, vector<1x64xf32>
    %14 = vector.broadcast %13 : vector<1x64xf32> to vector<8x64xf32>
    %15 = arith.addf %12, %14 : vector<8x64xf32>
    %16 = vector.extract_strided_slice %15 {offsets = [0, 0], sizes = [8, 32], strides = [1, 1]} : vector<8x64xf32> to vector<8x32xf32>
    %17 = vector.extract_strided_slice %15 {offsets = [0, 32], sizes = [8, 32], strides = [1, 1]} : vector<8x64xf32> to vector<8x32xf32>
    %18 = vector.shape_cast %10 : vector<8x32xf32> to vector<8x4x8xf32>
    %19 = arith.truncf %18 : vector<8x4x8xf32> to vector<8x4x8xbf16>
    %20 = vector.shape_cast %16 : vector<8x32xf32> to vector<8x4x8xf32>
    %21 = arith.truncf %20 : vector<8x4x8xf32> to vector<8x4x8xbf16>
    %22 = vector.shape_cast %17 : vector<8x32xf32> to vector<8x4x8xf32>
    %23 = arith.truncf %22 : vector<8x4x8xf32> to vector<8x4x8xbf16>
    "tpu.trace_start"() <{level = 10 : i32, message = "qhd,khd->hqk"}> : () -> ()
    %cst_14 = arith.constant dense<0.000000e+00> : vector<4x8x8xf32>
    %24 = tpu.matmul %19, %21, %cst_14 {dimension_numbers = #tpu.dot_dimension_numbers<[2], [2], [0], [0], [0, 1, 0, 0, 1, 0], [1], [1]>} : vector<8x4x8xbf16>, vector<8x4x8xbf16>, vector<4x8x8xf32> -> vector<4x8x8xf32>
    "tpu.trace_stop"() : () -> ()
    %cst_15 = arith.constant 0.353553385 : f32
    %25 = vector.broadcast %cst_15 : f32 to vector<4x8x8xf32>
    %26 = arith.mulf %24, %25 : vector<4x8x8xf32>
    %cst_16 = arith.constant dense<0xFF800000> : vector<4x8xf32>
    %27 = vector.multi_reduction <maximumf>, %26, %cst_16 [2] : vector<4x8x8xf32> to vector<4x8xf32>
    %28 = vector.shape_cast %27 : vector<4x8xf32> to vector<4x8x1xf32>
    %29 = vector.broadcast %28 : vector<4x8x1xf32> to vector<4x8x8xf32>
    %30 = arith.subf %26, %29 : vector<4x8x8xf32>
    %31 = math.exp %30 : vector<4x8x8xf32>
    %cst_17 = arith.constant dense<0.000000e+00> : vector<4x8xf32>
    %32 = vector.multi_reduction <add>, %31, %cst_17 [2] : vector<4x8x8xf32> to vector<4x8xf32>
    %33 = vector.shape_cast %32 : vector<4x8xf32> to vector<4x8x1xf32>
    %34 = tpu.reciprocal %33 {approx = true} : vector<4x8x1xf32> -> vector<4x8x1xf32>
    %35 = vector.broadcast %34 : vector<4x8x1xf32> to vector<4x8x8xf32>
    %36 = arith.mulf %31, %35 : vector<4x8x8xf32>
    %37 = arith.truncf %36 : vector<4x8x8xf32> to vector<4x8x8xbf16>
    "tpu.trace_start"() <{level = 10 : i32, message = "hqk,khd->qhd"}> : () -> ()
    %cst_18 = arith.constant dense<0.000000e+00> : vector<4x8x8xf32>
    %38 = tpu.matmul %23, %37, %cst_18 {dimension_numbers = #tpu.dot_dimension_numbers<[0], [2], [2], [1], [0, 1, 0, 2, 1, 1], [1], [0]>} : vector<8x4x8xbf16>, vector<4x8x8xbf16>, vector<4x8x8xf32> -> vector<4x8x8xf32>
    %39 = tpu.transpose %38, [2, 0, 1] : vector<4x8x8xf32> -> vector<8x4x8xf32>
    "tpu.trace_stop"() : () -> ()
    %40 = vector.shape_cast %39 : vector<8x4x8xf32> to vector<8x32xf32>
    %41 = arith.truncf %40 : vector<8x32xf32> to vector<8x32xbf16>
    %c0_19 = arith.constant 0 : index
    %c0_20 = arith.constant 0 : index
    %42 = vector.load %arg8[%c0_19, %c0_20] : memref<32x32xbf16, #tpu.memory_space<vmem>>, vector<32x32xbf16>
    %cst_21 = arith.constant dense<0.000000e+00> : vector<8x32xf32>
    %43 = tpu.matmul %41, %42, %cst_21 {dimension_numbers = #tpu.dot_dimension_numbers<[1], [0], [0], [1], [0, 0, 1, 1], [], []>} : vector<8x32xbf16>, vector<32x32xbf16>, vector<8x32xf32> -> vector<8x32xf32>
    %c0_22 = arith.constant 0 : index
    %c0_23 = arith.constant 0 : index
    %44 = vector.load %arg9[%c0_22, %c0_23] : memref<1x32xf32, #tpu.memory_space<vmem>>, vector<1x32xf32>
    %45 = vector.broadcast %44 : vector<1x32xf32> to vector<8x32xf32>
    %46 = arith.addf %43, %45 : vector<8x32xf32>
    %47 = arith.addf %1, %46 : vector<8x32xf32>
    %cst_24 = arith.constant dense<0.000000e+00> : vector<8xf32>
    %48 = vector.multi_reduction <add>, %47, %cst_24 [1] : vector<8x32xf32> to vector<8xf32>
    %49 = vector.shape_cast %48 : vector<8xf32> to vector<8x1xf32>
    %cst_25 = arith.constant 3.200000e+01 : f32
    %50 = vector.broadcast %cst_25 : f32 to vector<8x1xf32>
    %51 = arith.divf %49, %50 : vector<8x1xf32>
    %52 = vector.broadcast %51 : vector<8x1xf32> to vector<8x32xf32>
    %53 = arith.subf %47, %52 : vector<8x32xf32>
    %54 = arith.mulf %53, %53 : vector<8x32xf32>
    %cst_26 = arith.constant dense<0.000000e+00> : vector<8xf32>
    %55 = vector.multi_reduction <add>, %54, %cst_26 [1] : vector<8x32xf32> to vector<8xf32>
    %56 = vector.shape_cast %55 : vector<8xf32> to vector<8x1xf32>
    %cst_27 = arith.constant 3.200000e+01 : f32
    %57 = vector.broadcast %cst_27 : f32 to vector<8x1xf32>
    %58 = arith.divf %56, %57 : vector<8x1xf32>
    %59 = vector.broadcast %51 : vector<8x1xf32> to vector<8x32xf32>
    %60 = arith.subf %47, %59 : vector<8x32xf32>
    %cst_28 = arith.constant 9.99999974E-6 : f32
    %61 = vector.broadcast %cst_28 : f32 to vector<8x1xf32>
    %62 = arith.addf %58, %61 : vector<8x1xf32>
    %63 = math.rsqrt %62 : vector<8x1xf32>
    %64 = vector.broadcast %63 : vector<8x1xf32> to vector<8x32xf32>
    %65 = arith.mulf %60, %64 : vector<8x32xf32>
    %c0_29 = arith.constant 0 : index
    %c0_30 = arith.constant 0 : index
    %66 = vector.load %arg10[%c0_29, %c0_30] : memref<1x32xf32, #tpu.memory_space<vmem>>, vector<1x32xf32>
    %67 = vector.broadcast %66 : vector<1x32xf32> to vector<8x32xf32>
    %68 = arith.mulf %65, %67 : vector<8x32xf32>
    %c0_31 = arith.constant 0 : index
    %c0_32 = arith.constant 0 : index
    %69 = vector.load %arg11[%c0_31, %c0_32] : memref<1x32xf32, #tpu.memory_space<vmem>>, vector<1x32xf32>
    %70 = vector.broadcast %69 : vector<1x32xf32> to vector<8x32xf32>
    %71 = arith.addf %68, %70 : vector<8x32xf32>
    %72 = arith.truncf %71 : vector<8x32xf32> to vector<8x32xbf16>
    %cst_33 = arith.constant 0.000000e+00 : f32
    %73 = vector.broadcast %cst_33 : f32 to vector<8x32xf32>
    %c0_34 = arith.constant 0 : index
    %c0_35 = arith.constant 0 : index
    %74 = vector.load %arg12[%c0_34, %c0_35] : memref<32x64xbf16, #tpu.memory_space<vmem>>, vector<32x64xbf16>
    %cst_36 = arith.constant dense<0.000000e+00> : vector<8x64xf32>
    %75 = tpu.matmul %72, %74, %cst_36 {dimension_numbers = #tpu.dot_dimension_numbers<[1], [0], [0], [1], [0, 0, 1, 1], [], []>} : vector<8x32xbf16>, vector<32x64xbf16>, vector<8x64xf32> -> vector<8x64xf32>
    %c0_37 = arith.constant 0 : index
    %c0_38 = arith.constant 0 : index
    %76 = vector.load %arg13[%c0_37, %c0_38] : memref<1x64xf32, #tpu.memory_space<vmem>>, vector<1x64xf32>
    %77 = vector.broadcast %76 : vector<1x64xf32> to vector<8x64xf32>
    %78 = arith.addf %75, %77 : vector<8x64xf32>
    %cst_39 = arith.constant 0.000000e+00 : f32
    %79 = vector.broadcast %cst_39 : f32 to vector<8x64xf32>
    %80 = arith.maximumf %78, %79 : vector<8x64xf32>
    %81 = arith.truncf %80 : vector<8x64xf32> to vector<8x64xbf16>
    %c0_40 = arith.constant 0 : index
    %c0_41 = arith.constant 0 : index
    %82 = vector.load %arg14[%c0_40, %c0_41] : memref<64x32xbf16, #tpu.memory_space<vmem>>, vector<64x32xbf16>
    %cst_42 = arith.constant dense<0.000000e+00> : vector<8x32xf32>
    %83 = tpu.matmul %81, %82, %cst_42 {dimension_numbers = #tpu.dot_dimension_numbers<[1], [0], [0], [1], [0, 0, 1, 1], [], []>} : vector<8x64xbf16>, vector<64x32xbf16>, vector<8x32xf32> -> vector<8x32xf32>
    %84 = arith.addf %73, %83 : vector<8x32xf32>
    %c0_43 = arith.constant 0 : index
    %c0_44 = arith.constant 0 : index
    %85 = vector.load %arg15[%c0_43, %c0_44] : memref<1x32xf32, #tpu.memory_space<vmem>>, vector<1x32xf32>
    %86 = vector.broadcast %85 : vector<1x32xf32> to vector<8x32xf32>
    %87 = arith.addf %84, %86 : vector<8x32xf32>
    %88 = arith.addf %71, %87 : vector<8x32xf32>
    %cst_45 = arith.constant dense<0.000000e+00> : vector<8xf32>
    %89 = vector.multi_reduction <add>, %88, %cst_45 [1] : vector<8x32xf32> to vector<8xf32>
    %90 = vector.shape_cast %89 : vector<8xf32> to vector<8x1xf32>
    %cst_46 = arith.constant 3.200000e+01 : f32
    %91 = vector.broadcast %cst_46 : f32 to vector<8x1xf32>
    %92 = arith.divf %90, %91 : vector<8x1xf32>
    %93 = vector.broadcast %92 : vector<8x1xf32> to vector<8x32xf32>
    %94 = arith.subf %88, %93 : vector<8x32xf32>
    %95 = arith.mulf %94, %94 : vector<8x32xf32>
    %cst_47 = arith.constant dense<0.000000e+00> : vector<8xf32>
    %96 = vector.multi_reduction <add>, %95, %cst_47 [1] : vector<8x32xf32> to vector<8xf32>
    %97 = vector.shape_cast %96 : vector<8xf32> to vector<8x1xf32>
    %cst_48 = arith.constant 3.200000e+01 : f32
    %98 = vector.broadcast %cst_48 : f32 to vector<8x1xf32>
    %99 = arith.divf %97, %98 : vector<8x1xf32>
    %100 = vector.broadcast %92 : vector<8x1xf32> to vector<8x32xf32>
    %101 = arith.subf %88, %100 : vector<8x32xf32>
    %cst_49 = arith.constant 9.99999974E-6 : f32
    %102 = vector.broadcast %cst_49 : f32 to vector<8x1xf32>
    %103 = arith.addf %99, %102 : vector<8x1xf32>
    %104 = math.rsqrt %103 : vector<8x1xf32>
    %105 = vector.broadcast %104 : vector<8x1xf32> to vector<8x32xf32>
    %106 = arith.mulf %101, %105 : vector<8x32xf32>
    %c0_50 = arith.constant 0 : index
    %c0_51 = arith.constant 0 : index
    %107 = vector.load %arg16[%c0_50, %c0_51] : memref<1x32xf32, #tpu.memory_space<vmem>>, vector<1x32xf32>
    %108 = vector.broadcast %107 : vector<1x32xf32> to vector<8x32xf32>
    %109 = arith.mulf %106, %108 : vector<8x32xf32>
    %c0_52 = arith.constant 0 : index
    %c0_53 = arith.constant 0 : index
    %110 = vector.load %arg17[%c0_52, %c0_53] : memref<1x32xf32, #tpu.memory_space<vmem>>, vector<1x32xf32>
    %111 = vector.broadcast %110 : vector<1x32xf32> to vector<8x32xf32>
    %112 = arith.addf %109, %111 : vector<8x32xf32>
    %c0_54 = arith.constant 0 : index
    %c0_55 = arith.constant 0 : index
    %c0_56 = arith.constant 0 : index
    %113 = vector.load %arg18[%c0_54, %c0_55, %c0_56] : memref<1x8x32xf32, #tpu.memory_space<vmem>>, vector<1x8x32xf32>
    %114 = vector.shape_cast %113 : vector<1x8x32xf32> to vector<8x32xf32>
    %115 = vector.shape_cast %112 : vector<8x32xf32> to vector<1x8x32xf32>
    tpu.vector_store %arg18[%c0_54, %c0_55, %c0_56], %115 {strides = array<i32>} : memref<1x8x32xf32, #tpu.memory_space<vmem>>, vector<1x8x32xf32>,
    return
  }
  func.func @transform_0(%arg0: i32, %arg1: i32) -> (i32, i32, i32) {
    %c0_i32 = arith.constant 0 : i32
    %c0_i32_0 = arith.constant 0 : i32
    return %arg0, %arg1, %c0_i32 : i32, i32, i32
  }
  func.func @transform_1(%arg0: i32, %arg1: i32) -> (i32, i32, i32) {
    %c0_i32 = arith.constant 0 : i32
    %c0_i32_0 = arith.constant 0 : i32
    %c0_i32_1 = arith.constant 0 : i32
    return %arg0, %c0_i32, %c0_i32_0 : i32, i32, i32
  }
  func.func @transform_2(%arg0: i32, %arg1: i32) -> (i32, i32) {
    %c0_i32 = arith.constant 0 : i32
    %c0_i32_0 = arith.constant 0 : i32
    %c0_i32_1 = arith.constant 0 : i32
    return %c0_i32, %c0_i32_0 : i32, i32
  }
  func.func @transform_3(%arg0: i32, %arg1: i32) -> (i32, i32) {
    %c0_i32 = arith.constant 0 : i32
    %c0_i32_0 = arith.constant 0 : i32
    %c0_i32_1 = arith.constant 0 : i32
    return %c0_i32, %c0_i32_0 : i32, i32
  }
  func.func @transform_4(%arg0: i32, %arg1: i32) -> (i32, i32) {
    %c0_i32 = arith.constant 0 : i32
    %c0_i32_0 = arith.constant 0 : i32
    %c0_i32_1 = arith.constant 0 : i32
    return %c0_i32, %c0_i32_0 : i32, i32
  }
  func.func @transform_5(%arg0: i32, %arg1: i32) -> (i32, i32) {
    %c0_i32 = arith.constant 0 : i32
    %c0_i32_0 = arith.constant 0 : i32
    %c0_i32_1 = arith.constant 0 : i32
    return %c0_i32, %c0_i32_0 : i32, i32
  }
  func.func @transform_6(%arg0: i32, %arg1: i32) -> (i32, i32) {
    %c0_i32 = arith.constant 0 : i32
    %c0_i32_0 = arith.constant 0 : i32
    %c0_i32_1 = arith.constant 0 : i32
    return %c0_i32, %c0_i32_0 : i32, i32
  }
  func.func @transform_7(%arg0: i32, %arg1: i32) -> (i32, i32) {
    %c0_i32 = arith.constant 0 : i32
    %c0_i32_0 = arith.constant 0 : i32
    %c0_i32_1 = arith.constant 0 : i32
    return %c0_i32, %c0_i32_0 : i32, i32
  }
  func.func @transform_8(%arg0: i32, %arg1: i32) -> (i32, i32) {
    %c0_i32 = arith.constant 0 : i32
    %c0_i32_0 = arith.constant 0 : i32
    %c0_i32_1 = arith.constant 0 : i32
    return %c0_i32, %c0_i32_0 : i32, i32
  }
  func.func @transform_9(%arg0: i32, %arg1: i32) -> (i32, i32) {
    %c0_i32 = arith.constant 0 : i32
    %c0_i32_0 = arith.constant 0 : i32
    %c0_i32_1 = arith.constant 0 : i32
    return %c0_i32, %c0_i32_0 : i32, i32
  }
  func.func @transform_10(%arg0: i32, %arg1: i32) -> (i32, i32) {
    %c0_i32 = arith.constant 0 : i32
    %c0_i32_0 = arith.constant 0 : i32
    %c0_i32_1 = arith.constant 0 : i32
    return %c0_i32, %c0_i32_0 : i32, i32
  }
  func.func @transform_11(%arg0: i32, %arg1: i32) -> (i32, i32) {
    %c0_i32 = arith.constant 0 : i32
    %c0_i32_0 = arith.constant 0 : i32
    %c0_i32_1 = arith.constant 0 : i32
    return %c0_i32, %c0_i32_0 : i32, i32
  }
  func.func @transform_12(%arg0: i32, %arg1: i32) -> (i32, i32) {
    %c0_i32 = arith.constant 0 : i32
    %c0_i32_0 = arith.constant 0 : i32
    %c0_i32_1 = arith.constant 0 : i32
    return %c0_i32, %c0_i32_0 : i32, i32
  }
  func.func @transform_13(%arg0: i32, %arg1: i32) -> (i32, i32) {
    %c0_i32 = arith.constant 0 : i32
    %c0_i32_0 = arith.constant 0 : i32
    %c0_i32_1 = arith.constant 0 : i32
    return %c0_i32, %c0_i32_0 : i32, i32
  }
  func.func @transform_14(%arg0: i32, %arg1: i32) -> (i32, i32) {
    %c0_i32 = arith.constant 0 : i32
    %c0_i32_0 = arith.constant 0 : i32
    %c0_i32_1 = arith.constant 0 : i32
    return %c0_i32, %c0_i32_0 : i32, i32
  }
  func.func @transform_15(%arg0: i32, %arg1: i32) -> (i32, i32) {
    %c0_i32 = arith.constant 0 : i32
    %c0_i32_0 = arith.constant 0 : i32
    %c0_i32_1 = arith.constant 0 : i32
    return %c0_i32, %c0_i32_0 : i32, i32
  }
  func.func @transform_16(%arg0: i32, %arg1: i32) -> (i32, i32, i32) {
    %c0_i32 = arith.constant 0 : i32
    %c0_i32_0 = arith.constant 0 : i32
    return %arg0, %arg1, %c0_i32 : i32, i32, i32
  }
}

</mosaic_0001>

<bundles_post_ra>
// kernel: tpu_custom_call.1
= control target key start
LH: loop header
LB: loop body
LE: loop exit
PB: predicated region body
PF: predicated region fallthrough
CT: control target
= control target key end

     0   :  { %s4278_s0 = inlined_call_operand.vmem [shape: f32[2,8,32], index: 0, kind: input, shape index: {}]   ;;  %s4279_s1 = inlined_call_operand.vmem [shape: f32[2,8,32], index: 1, kind: input, shape index: {}]   ;;  %s4280_s2 = inlined_call_operand.vmem [shape: bf16[32,32], index: 2, kind: input, shape index: {}]   ;;  %s4281_s3 = inlined_call_operand.vmem [shape: f32[1,32], index: 3, kind: input, shape index: {}]   ;;  %s4282_s4 = inlined_call_operand.hbm [shape: bf16[32,64], index: 4, kind: input, shape index: {}]   ;;  %s4283_s5 = inlined_call_operand.vmem [shape: f32[1,64], index: 5, kind: input, shape index: {}]   ;;  %s4284_s6 = inlined_call_operand.hbm [shape: bf16[32,32], index: 6, kind: input, shape index: {}]   ;;  %s4285_s7 = inlined_call_operand.hbm [shape: f32[1,32], index: 7, kind: input, shape index: {}]   ;;  %s4286_s8 = inlined_call_operand.hbm [shape: f32[1,32], index: 8, kind: input, shape index: {}]   ;;  %s4287_s9 = inlined_call_operand.hbm [shape: f32[1,32], index: 9, kind: input, shape index: {}]   ;;  %s4288_s10 = inlined_call_operand.vmem [shape: bf16[32,64], index: 10, kind: input, shape index: {}]   ;;  %s4289_s11 = inlined_call_operand.vmem [shape: f32[1,64], index: 11, kind: input, shape index: {}]   ;;  %s4290_s12 = inlined_call_operand.vmem [shape: bf16[64,32], index: 12, kind: input, shape index: {}]   ;;  %s4291_s13 = inlined_call_operand.vmem [shape: f32[1,32], index: 13, kind: input, shape index: {}]   ;;  %s4292_s14 = inlined_call_operand.vmem [shape: f32[1,32], index: 14, kind: input, shape index: {}]   ;;  %s4293_s15 = inlined_call_operand.vmem [shape: f32[1,32], index: 15, kind: input, shape index: {}]   ;;  %s4294_s16 = inlined_call_operand.hbm [shape: f32[2,8,32], index: 16, kind: output, shape index: {}]  }
   0x1   :  { %4312 = sst [smem:[#allocation25_spill]] %s4278_s0 }
   0x2   :  { %4313 = sst [smem:[#allocation26_spill]] %s4292_s14 }
   0x3   :  { %4314 = sst [smem:[#allocation27_spill]] %s4293_s15 }
   0x4   :  { %4315 = sst [smem:[#allocation28_spill]] %s4294_s16 }
   0x5   :  { %21 = vsyncpa [#allocation3], 0 }
   0x6   :  { %22 = vsyncpa [#allocation6], 0 }
   0x7   :  { %23 = vsyncpa [#allocation9], 0 }
   0x8   :  { %24 = vsyncpa [#allocation4], 0 }
   0x9   :  { %26 = vsyncpa [#allocation4 + $0x1], 0  ;;  %s3731_s21 = smov 0   ;;  %s3733_s22 = smov 0  }
   0xa   :  { %s3735_s23 = smov 0   ;;  %s3737_s24 = smov 0  }
   0xb   :  { %s3739_s25 = smov 0   ;;  %s3741_s26 = smov 0  }
   0xc LB: > { %4316 = sst [smem:[#allocation16_spill]] %s3604_s21  ;;  %s3054_s27 = sadd.s32 4294967295, %s3624_s26   ;;  %s3624_s26 = sphi %s3741_s26, %s32_s26   ;;  %s3620_s25 = sphi %s3739_s25, %s4350_s25   ;;  %s3616_s24 = sphi %s3737_s24, %s4349_s24   ;;  %s3612_s23 = sphi %s3735_s23, %s4348_s23   ;;  %s3608_s22 = sphi %s3733_s22, %s4347_s22   ;;  %s3604_s21 = sphi %s3731_s21, %s4346_s21  }
   0xd   : > { %4317 = sst [smem:[#allocation17_spill]] %s3608_s22  ;;  %s3055_s28 = sadd.s32 4294967294, %s3624_s26  }
   0xe   : > { %4318 = sst [smem:[#allocation18_spill]] %s3612_s23  ;;  %s44_s29 = sadd.s32 1, %s3620_s25 }
   0xf   : > { %4319 = sst [smem:[#allocation19_spill]] %s3620_s25  ;;  %s401_s30 = sadd.s32 1, %s3612_s23 }
  0x10   : > { %4320 = sst [smem:[#allocation20_spill]] %s3624_s26  ;;  %p46_p0 = scmp.ge.s32.totalorder %s44_s29, 2 }
  0x11   : > { %p411_p1 = scmp.ne.s32.totalorder %s3612_s23, %s3608_s22  ;;  %p412_p2 = scmp.eq.s32.totalorder %s3054_s27, 1 }
  0x12   : > { %p417_p3 = scmp.ne.s32.totalorder %s3608_s22, %s3604_s21  ;;  %s4352_s29 = smov (%p46_p0, %s44_s29), 0 }
  0x13   : > { %4321 = sst [smem:[#allocation21_spill]] %s4352_s29  ;;  %p3771_p4 = por %p412_p2, %p411_p1 }
  0x14   : > { %p418_p5 = scmp.eq.s32.totalorder %s3055_s28, 1  ;;  %s396_s17 = ssub.s32 %s3620_s25, %s4352_s29 }
  0x15   : > { %s4322_s0 = scalar_select %p3771_p4, 1, 0 }
  0x16   : > { %p3056_p6 = scmp.ge.s32.totalorder %s3624_s26, 1  ;;  %p399_p7 = scmp.eq.s32.totalorder %s396_s17, 0 }
  0x17   : > { %4323 = sst [smem:[#allocation22_spill]] %s4322_s0  ;;  %p3778_p8 = por %p418_p5, %p417_p3 }
  0x18   : > { %p425_p9 = scmp.lt.s32.totalorder %s3624_s26, 3  ;;  %p3790_p11 = scmp.eq.s32.totalorder %s3054_s27, 0 }
  0x19   : > { %s4324_s18 = scalar_select %p3778_p8, 1, 0 }
  0x1a   : > { %s3784_s19 = scalar_select %p399_p7, %s3612_s23, %s401_s30  }
  0x1b   : > { %4325 = sst [smem:[#allocation23_spill]] %s4324_s18  ;;  %p3786_p10 = pnand %p3056_p6, %p425_p9 }
  0x1c   : > { %4326 = sst [smem:[#allocation24_spill]] %s3784_s19  ;;  %s3626_s28 = smov [#allocation5]  }
  0x1d   : > { %s4327_s20 = scalar_select %p3786_p10, 1, 0 }
  0x1e   : > { %s4328_s21 = scalar_select %p3790_p11, 1, 0 }
  0x1f   : > { %p3263_p12 = pneg %p3786_p10  ;;  %s459_s17 = sshll.u32 %s3626_s28, 4  ;;  %s460_s17 = int_to_ptr.vmem [resolvable:$true] %s459_s17 }
  0x20   : > { %s3627_s30 = smov [#allocation8]   ;;  %s3394_s23 = scalar_lea.hbm %s4284_s6, 256 }
  0x21   : > { %p3798_p13 = pnand %p3790_p11, %p3263_p12  ;;  %s484_s25 = sshll.u32 %s3627_s30, 4  ;;  %s3802_s25 = int_to_ptr.vmem [resolvable:$true] %s484_s25 }
  0x22   : > { %p3395_p0 = scmp.ne.s32.totalorder %s4284_s6, %s3394_s23  ;;  %p3401_p5 = scmp.lt.u32.totalorder %s3394_s23, %s4284_s6 }
  0x23   : > { %p3812_p1 = pneg %p3798_p13 }
  0x25   : > { %p3397_p2 = pnand %p3812_p1, %p3395_p0 }
  0x27   : > { %p3398_p3 = pneg %p3397_p2 }
  0x29   : > { %p3403_p6 = pnand %p3401_p5, %p3398_p3 }
  0x2b   : > { %3406 = shalt.err (!%p3403_p6)
}
  0x2c   : > { %s3407_s19 = scalar_lea.vmem %s460_s17, 256  ;;  %p3415_p8 = scmp.lt.s32.totalorder %s460_s17, %s460_s17 }
  0x2d   : > { %p3408_p7 = scmp.ne.s32.totalorder %s460_s17, %s3407_s19  ;;  %p3416_p4 = scmp.lt.s32.totalorder %s3407_s19, %s3407_s19 }
  0x2f   : > { %p3410_p9 = pnand %p3408_p7, %p3812_p1  ;;  %p3417_p11 = por %p3416_p4, %p3415_p8 }
  0x31   : > { %p3411_p12 = pneg %p3410_p9 }
  0x33   : > { %p3418_p10 = pnand %p3417_p11, %p3411_p12 }
  0x35   : > { %3421 = shalt.err (!%p3418_p10)
}
  0x36   : > { %s4310_s26 = smov 64   ;;  %s4311_s18 = smov 4  }
  0x37   : > { %3269 = dma.hbm_to_vmem [thread:$0]  (!%p3798_p13), %s4284_s6, 256, %s460_s17, [#allocation6], %s4310_s26, %s4310_s26, %s4311_s18  }
  0x38   : > { %s3422_s15 = scalar_lea.hbm %s4286_s8, 16 }
  0x39   : > { %p3423_p4 = scmp.ne.s32.totalorder %s4286_s8, %s3422_s15  ;;  %p3429_p11 = scmp.lt.u32.totalorder %s3422_s15, %s4286_s8 }
  0x3b   : > { %p3425_p8 = pnand %p3423_p4, %p3812_p1 }
  0x3d   : > { %p3426_p10 = pneg %p3425_p8 }
  0x3f   : > { %p3431_p0 = pnand %p3429_p11, %p3426_p10 }
  0x41   : > { %3434 = shalt.err (!%p3431_p0)
}
  0x42   : > { %s3435_s17 = scalar_lea.vmem %s3802_s25, 16  ;;  %s3442_s14 = scalar_lea.vmem %s3802_s25, 32 }
  0x43   : > { %p3436_p2 = scmp.ne.s32.totalorder %s3802_s25, %s3435_s17  ;;  %p3443_p6 = scmp.lt.s32.totalorder %s3802_s25, %s3802_s25 }
  0x44   : > { %p3444_p7 = scmp.lt.s32.totalorder %s3442_s14, %s3435_s17 }
  0x45   : > { %p3438_p3 = pnand %p3436_p2, %p3812_p1 }
  0x46   : > { %p3445_p9 = por %p3444_p7, %p3443_p6 }
  0x47   : > { %p3439_p5 = pneg %p3438_p3 }
  0x49   : > { %p3446_p12 = pnand %p3445_p9, %p3439_p5 }
  0x4b   : > { %3449 = shalt.err (!%p3446_p12)
}
  0x4c   : > { %3275 = dma.hbm_to_vmem [thread:$0]  (!%p3798_p13), %s4286_s8, 16, %s3802_s25, [#allocation9]  }
  0x4d   : > { %s3630_s0 = smov [#allocation2]   ;;  %s3631_s23 = smov [#allocation7]  }
  0x4e   : > { %s443_s16 = sshll.u32 %s3630_s0, 4  ;;  %s473_s27 = sshll.u32 %s3631_s23, 4  ;;  %s444_s16 = int_to_ptr.vmem [resolvable:$true] %s443_s16  ;;  %s474_s27 = int_to_ptr.vmem [resolvable:$true] %s473_s27 }
  0x4f   : > { %s3450_s17 = scalar_lea.hbm %s4282_s4, 256 }
  0x50   : > { %p3451_p4 = scmp.ne.s32.totalorder %s4282_s4, %s3450_s17  ;;  %p3457_p11 = scmp.lt.u32.totalorder %s3450_s17, %s4282_s4 }
  0x52   : > { %p3453_p8 = pnand %p3451_p4, %p3812_p1 }
  0x54   : > { %p3454_p10 = pneg %p3453_p8 }
  0x56   : > { %p3459_p0 = pnand %p3457_p11, %p3454_p10 }
  0x58   : > { %3462 = shalt.err (!%p3459_p0)
}
  0x59   : > { %s3463_s25 = scalar_lea.vmem %s444_s16, 256  ;;  %p3471_p6 = scmp.lt.s32.totalorder %s444_s16, %s444_s16 }
  0x5a   : > { %p3464_p2 = scmp.ne.s32.totalorder %s444_s16, %s3463_s25  ;;  %p3472_p7 = scmp.lt.s32.totalorder %s3463_s25, %s3463_s25 }
  0x5c   : > { %p3466_p3 = pnand %p3464_p2, %p3812_p1  ;;  %p3473_p9 = por %p3472_p7, %p3471_p6 }
  0x5e   : > { %p3467_p5 = pneg %p3466_p3 }
  0x60   : > { %p3474_p12 = pnand %p3473_p9, %p3467_p5 }
  0x62   : > { %3477 = shalt.err (!%p3474_p12)
}
  0x63   : > { %s4331_s26 = smov 4   ;;  %s4332_s22 = smov 64  }
  0x64   : > { %3266 = dma.hbm_to_vmem [thread:$0]  (!%p3798_p13), %s4282_s4, 256, %s444_s16, [#allocation3], %s4332_s22, %s4332_s22, %s4331_s26  }
  0x65   : > { %s3478_s19 = scalar_lea.hbm %s4285_s7, 16 }
  0x66   : > { %p3479_p4 = scmp.ne.s32.totalorder %s4285_s7, %s3478_s19  ;;  %p3485_p11 = scmp.lt.u32.totalorder %s3478_s19, %s4285_s7 }
  0x68   : > { %p3481_p8 = pnand %p3479_p4, %p3812_p1 }
  0x6a   : > { %p3482_p10 = pneg %p3481_p8 }
  0x6c   : > { %p3487_p0 = pnand %p3485_p11, %p3482_p10 }
  0x6e   : > { %3490 = shalt.err (!%p3487_p0)
}
  0x6f   : > { %s3491_s18 = scalar_lea.vmem %s474_s27, 16  ;;  %s3498_s16 = scalar_lea.vmem %s474_s27, 32 }
  0x70   : > { %p3492_p2 = scmp.ne.s32.totalorder %s474_s27, %s3491_s18  ;;  %p3499_p6 = scmp.lt.s32.totalorder %s474_s27, %s474_s27 }
  0x71   : > { %p3500_p7 = scmp.lt.s32.totalorder %s3498_s16, %s3491_s18 }
  0x72   : > { %p3494_p3 = pnand %p3492_p2, %p3812_p1 }
  0x73   : > { %p3501_p9 = por %p3500_p7, %p3499_p6 }
  0x74   : > { %p3495_p5 = pneg %p3494_p3 }
  0x76   : > { %p3502_p12 = pnand %p3501_p9, %p3495_p5 }
  0x78   : > { %3505 = shalt.err (!%p3502_p12)
}
  0x79   : > { %3272 = dma.hbm_to_vmem [thread:$0]  (!%p3798_p13), %s4285_s7, 16, %s474_s27, [#allocation6]  }
  0x7a   : > { %s3632_s0 = smov [#allocation10]   ;;  %s3506_s17 = scalar_lea.hbm %s4287_s9, 16 }
  0x7b   : > { %s495_s23 = sshll.u32 %s3632_s0, 4  ;;  %p3507_p4 = scmp.ne.s32.totalorder %s4287_s9, %s3506_s17  ;;  %s496_s23 = int_to_ptr.vmem [resolvable:$true] %s495_s23 }
  0x7c   : > { %p3513_p11 = scmp.lt.u32.totalorder %s3506_s17, %s4287_s9 }
  0x7d   : > { %p3509_p8 = pnand %p3507_p4, %p3812_p1 }
  0x7f   : > { %p3510_p10 = pneg %p3509_p8 }
  0x81   : > { %p3515_p0 = pnand %p3513_p11, %p3510_p10 }
  0x83   : > { %3518 = shalt.err (!%p3515_p0)
}
  0x84   : > { %s3519_s27 = scalar_lea.vmem %s496_s23, 16  ;;  %s3526_s16 = scalar_lea.vmem %s496_s23, 32 }
  0x85   : > { %p3520_p2 = scmp.ne.s32.totalorder %s496_s23, %s3519_s27  ;;  %p3527_p6 = scmp.lt.s32.totalorder %s496_s23, %s496_s23 }
  0x86   : > { %p3528_p7 = scmp.lt.s32.totalorder %s3526_s16, %s3519_s27 }
  0x87   : > { %p3522_p3 = pnand %p3520_p2, %p3812_p1 }
  0x88   : > { %p3529_p9 = por %p3528_p7, %p3527_p6 }
  0x89   : > { %p3523_p5 = pneg %p3522_p3 }
  0x8b   : > { %p3530_p12 = pnand %p3529_p9, %p3523_p5 }
  0x8d   : > { %3533 = shalt.err (!%p3530_p12)
}
  0x8e   : > { %3278 = dma.hbm_to_vmem [thread:$0]  (!%p3798_p13), %s4287_s9, 16, %s496_s23, [#allocation9]  }
  0x8f   : > { %p4333_p4 = scmp.ne.s32.totalorder %s4327_s20, 0 }
  0x90   : > { %p4334_p8 = scmp.ne.s32.totalorder (!%p4333_p4), %s4328_s21, 0 }
  0x91   : > { %543 = sbr.rel (%p4333_p4) target bundleno = 3353 (0xd19), region = 84 }
  0x98   : > { %3587 = dma.done.wait (%p4334_p8), [#allocation3], 256  }
  0x99   : > { %3589 = vsyncadd (%p4334_p8), [#allocation3], 4294967040 }
  0x9a   : > { %3591 = dma.done.wait (%p4334_p8), [#allocation6], 272  }
  0x9b   : > { %3593 = vsyncadd (%p4334_p8), [#allocation6], 4294967024 }
  0x9c   : > { %3595 = dma.done.wait (%p4334_p8), [#allocation9], 32  }
  0x9d   : > { %3597 = vsyncadd (%p4334_p8), [#allocation9], 4294967264  ;;  %p615_p13 = scmp.lt.s32.totalorder %s3616_s24, 1  ;;  %v3633_v0 = vmov 0.0   ;;  %vm3634_vm0 = vmmov 0   ;;  %s4335_s0 = sld [smem:[#allocation25_spill]]  ;;  %v779_v21 = vlaneseq }
  0x9e   : > { %3149 = vmatprep.subr.bf16.mxu1 %v3633_v0  ;;  %3153 = vmatprep.mubr.msk.bf16.mxu1 %vm3634_vm0, %v3633_v0  ;;  %v3361_v1 = vld [vmem:[%s4280_s2] sm:$0xff]   ;;  %v3362_v2 = vld [vmem:[%s4280_s2 + $0x8] sm:$0xff]   ;;  %vm654_vm1 = vcmask 261120   ;;  %s3635_s26 = smov 104   ;;  %s3636_s22 = smov 120   ;;  %vm1508_vm2 = vcmask 1043456  }
  0x9f   : > { %s616_s29 = scalar_select %p615_p13, %s3616_s24, 1  ;;  %3165 = vmatprep.subr.bf16.mxu0 %v3633_v0  ;;  %3167 = vmatprep.mubr.msk.bf16.mxu0 %vm3634_vm0, %v3633_v0  ;;  %v3363_v4 = vld [vmem:[#allocation2] sm:$0xff]   ;;  %v3364_v6 = vld [vmem:[#allocation2 + $0x8] sm:$0xff]   ;;  %v3638_v19 = vmov 1983009808   ;;  %v780_v25 = vshrl.u32 %v779_v21, 7 }
  0xa0   : > { %3150 = vmatpush3.bf16.msra.mxu1 %v3361_v1  ;;  %v3076_v13 = vld [vmem:[%s4283_s5] ss:$0 sm:$0xff]  ;;  %v777_v20 = vunpack.c.l.s4 %v3638_v19  ;;  %v3639_v22 = vmov 1934713408   ;;  %s3641_s21 = smov 96   ;;  %vm1504_vm3 = vcmask 64512  }
  0xa1   : > { %s3070_s20 = sshll.u32 %s616_s29, 3  ;;  %3151 = vmatprep.subr.bf16.mxu1 %v3633_v0  ;;  %s3637_s29 = smov 112   ;;  %v809_v23 = vunpack.c.l.s4 %v3639_v22  ;;  %v3072_v60 = vld [vmem:[%s4281_s3] ss:$0 sm:$0xff]  ;;  %vm2621_vm4 = vcmask 130048   ;;  %vm2623_vm5 = vcmask 195584  }
  0xa2   : > { %s625_s18 = scalar_lea.vmem %s4279_s1, %s3070_s20  ;;  %v778_v24 = vunpack.c.0.s8 %v777_v20  ;;  %s3643_s30 = smov 8   ;;  %vm2831_vm6 = vcmask 523264  }
  0xa3   : > { %s3937_s23 = scalar_lea.vmem %s4335_s0, %s3070_s20  ;;  %v629_v7 = vld [vmem:[%s625_s18] sm:$0xff]  ;;  %v810_v28 = vunpack.c.0.s8 %v809_v23  ;;  %s3642_s0 = smov 16  }
  0xa4   : > { %v627_v3 = vld [vmem:[%s3937_s23] sm:$0xff]  ;;  %3152 = vmatpush3.bf16.msra.mxu1 %v3362_v2  ;;  %v630_v8 = vpack.c.bf16 %v629_v7, %v629_v7  ;;  %v3976_v29 = vsub.s32 %v778_v24, %v780_v25  ;;  %s3644_s19 = smov 24   ;;  %s4337_s15 = sld [smem:[#allocation22_spill]] }
  0xa5   : > { %v628_v5 = vpack.c.bf16 %v627_v3, %v627_v3  ;;  %3157 = vmatprep.subr.bf16.mxu1 %v3633_v0  ;;  %v3988_v35 = vsub.s32 %v810_v28, %v780_v25  ;;  %s4338_s18 = sld [smem:[#allocation26_spill]] }
  0xa7   : > { %3154 = vmatmul.mubr.msk.bf16.vlgmr.msra.gmra.mrb[0].mxu1 %vm654_vm1, %v628_v5 }
  0xa8   : > { %3158 = vmatpush3.bf16.msra.mxu1 %v3363_v4  ;;  %3161 = vmatprep.mubr.msk.bf16.mxu1 %vm3634_vm0, %v3633_v0 }
  0xa9   : > { %3159 = vmatprep.subr.bf16.mxu1 %v3633_v0 }
  0xaa   : > { %p4341_p10 = scmp.ne.s32.totalorder %s4337_s15, 0 }
  0xac   : > { %3160 = vmatpush3.bf16.msra.mxu1 %v3364_v6 }
  0xad   : > { %3171 = vmatprep.subr.bf16.mxu1 %v3633_v0 }
  0xaf   : > { %3162 = vmatmul.mubr.msk.bf16.vlgmr.msra.gmra.mrb[4].mxu1 %vm654_vm1, %v630_v8 }
  0xb0   : > { %3173 = vmatprep.mubr.msk.bf16.mxu1 %vm3634_vm0, %v3633_v0 }
 0x17a   : > { %v3959_v9 = vpop.f32.mrb[0].mxu1 }
 0x17b   : > { %v3155_v10 = vpop.f32.mrb[1].mxu1  ;;  %v4006_v61 = vadd.f32 %v3072_v60, %v3959_v9 }
 0x17c   : > { %v695_v11 = vpop.f32.mrb[2].mxu1 }
 0x17d   : > { %v3156_v12 = vpop.f32.mrb[3].mxu1 }
 0x182   : > { %v758_v14 = vpop.f32.mrb[4].mxu1 }
 0x183   : > { %v3964_v15 = vadd.f32 %v3076_v13, %v758_v14  ;;  %v3163_v16 = vpop.f32.mrb[5].mxu1 }
 0x184   : > { %v761_v17 = vpop.f32.mrb[6].mxu1 }
 0x185   : > { %857 = vrot.lane.b32.xlu1 %v3964_v15, %s3635_s26  ;;  %851 = vrot.lane.b32.xlu0 %v3964_v15, %s3636_s22  ;;  %v3164_v18 = vpop.f32.mrb[7].mxu1 }
 0x189   : > { %854 = vrot.lane.b32.xlu0 %v3964_v15, %s3637_s29 }
 0x1f7   : > { %v3972_v26 = vpop.permute.xlu1 %857  ;;  %v3974_v27 = vpop.permute.xlu0 %851 }
 0x1f8   : > { %v876_v30 = vcombine.low %v3974_v27, %v3972_v26  ;;  %v877_v31 = vcombine.high %v3974_v27, %v3972_v26 }
 0x1fa   : > { %v884_v36 = vrot.slane %v876_v30, %v3976_v29  ;;  %v891_v37 = vrot.slane %v877_v31, %v3976_v29  ;;  %v3640_v30 = vmov 0  }
 0x1fb   : > { %v3982_v32 = vpop.permute.xlu0 %854 }
 0x1fc   : > { %v860_v33 = vcombine.low %v3964_v15, %v3982_v32  ;;  %v861_v34 = vcombine.high %v3964_v15, %v3982_v32 }
 0x1fe   : > { %v868_v38 = vrot.slane %v860_v33, %v3976_v29  ;;  %v875_v39 = vrot.slane %v861_v34, %v3976_v29 }
 0x200   : > { %v893_v40 = vcombine.high %v868_v38, %v884_v36  ;;  %v892_v41 = vcombine.low %v868_v38, %v884_v36  ;;  %v908_v42 = vcombine.low %v875_v39, %v891_v37  ;;  %v909_v45 = vcombine.high %v875_v39, %v891_v37 }
 0x202   : > { %v907_v43 = vrot.slane %v893_v40, %v3988_v35  ;;  %v900_v44 = vrot.slane %v892_v41, %v3988_v35  ;;  %v916_v48 = vrot.slane %v908_v42, %v3988_v35  ;;  %v923_v52 = vrot.slane %v909_v45, %v3988_v35 }
 0x204   : > { %v930_v46 = vpack.c.bf16 %v907_v43, %v907_v43  ;;  %v928_v47 = vpack.c.bf16 %v900_v44, %v900_v44  ;;  %v925_v49 = vcombine.high %v907_v43, %v3633_v0  ;;  %v932_v50 = vpack.c.bf16 %v916_v48, %v916_v48 }
 0x205   : > { %v926_v53 = vcombine.high %v916_v48, %v3633_v0  ;;  %v934_v54 = vpack.c.bf16 %v923_v52, %v923_v52  ;;  %v927_v56 = vcombine.high %v923_v52, %v3633_v0  ;;  %v924_v57 = vcombine.high %v900_v44, %v3633_v0 }
 0x206   : > { %1118 = vxpose.xlu0.c.b16.start.end [1/1] (short) (narrow) %v930_v46, 16  ;;  %1086 = vxpose.xlu1.c.b16.start.end [1/1] (short) (narrow) %v928_v47, 16  ;;  %v931_v51 = vpack.c.bf16 %v925_v49, %v925_v49 }
 0x207   : > { %v933_v55 = vpack.c.bf16 %v926_v53, %v926_v53  ;;  %v935_v58 = vpack.c.bf16 %v927_v56, %v927_v56  ;;  %v929_v59 = vpack.c.bf16 %v924_v57, %v924_v57 }
 0x20a   : > { %1150 = vxpose.xlu0.c.b16.start.end [1/1] (short) (narrow) %v932_v50, 16  ;;  %1134 = vxpose.xlu1.c.b16.start.end [1/1] (short) (narrow) %v931_v51, 16 }
 0x20e   : > { %1182 = vxpose.xlu0.c.b16.start.end [1/1] (short) (narrow) %v934_v54, 16  ;;  %1166 = vxpose.xlu1.c.b16.start.end [1/1] (short) (narrow) %v933_v55, 16 }
 0x212   : > { %1198 = vxpose.xlu1.c.b16.start.end [1/1] (short) (narrow) %v935_v58, 16  ;;  %1102 = vxpose.xlu0.c.b16.start.end [1/1] (short) (narrow) %v929_v59, 16 }
 0x216   : > { %768 = vrot.lane.b32.xlu1 %v4006_v61, %s3637_s29 }
 0x21a   : > { %771 = vrot.lane.b32.xlu1 %v4006_v61, %s3635_s26  ;;  %s4339_s26 = sld [smem:[#allocation27_spill]] }
 0x21b   : > { %765 = vrot.lane.b32.xlu0 %v4006_v61, %s3636_s22  ;;  %s3113_s22 = sshll.u32 %s3616_s24, 7  ;;  %s3645_s24 = smov [#allocation11]  }
 0x26c   : > { %v1126_v62 = vpop.trf.xlu0  ;;  %v1094_v63 = vpop.trf.xlu1 }
 0x270   : > { %v1158_v1 = vpop.trf.xlu0  ;;  %v1142_v2 = vpop.trf.xlu1 }
 0x271   : > { %v1214_v5 = vcombine.low %v1094_v63, %v1158_v1 }
 0x273   : > { %v1221_v10 = vrot.slane %v1214_v5, %v3976_v29 }
 0x274   : > { %v1190_v3 = vpop.trf.xlu0  ;;  %v1174_v4 = vpop.trf.xlu1 }
 0x275   : > { %v1222_v6 = vcombine.low %v1126_v62, %v1190_v3 }
 0x277   : > { %v1229_v7 = vrot.slane %v1222_v6, %v3976_v29 }
 0x278   : > { %v1206_v8 = vpop.trf.xlu1  ;;  %v1110_v9 = vpop.trf.xlu0 }
 0x279   : > { %v1256_v11 = vcombine.low %v1142_v2, %v1206_v8  ;;  %v1248_v12 = vcombine.low %v1110_v9, %v1174_v4  ;;  %v1230_v13 = vcombine.low %v1221_v10, %v1229_v7  ;;  %v1231_v14 = vcombine.high %v1221_v10, %v1229_v7 }
 0x27b   : > { %v1263_v16 = vrot.slane %v1256_v11, %v3976_v29  ;;  %v1255_v17 = vrot.slane %v1248_v12, %v3976_v29  ;;  %v1238_v20 = vrot.slane %v1230_v13, %v3988_v35  ;;  %v1245_v21 = vrot.slane %v1231_v14, %v3988_v35 }
 0x27d   : > { %v1264_v18 = vcombine.low %v1255_v17, %v1263_v16  ;;  %v1265_v19 = vcombine.high %v1255_v17, %v1263_v16  ;;  %v1286_v33 = vshrl.u32 %v1238_v20, 16  ;;  %v1246_v34 = vcombine.high %v1238_v20, %v3640_v30 }
 0x27e   : > { %v1247_v40 = vcombine.high %v1245_v21, %v3640_v30  ;;  %v1302_v41 = vshrl.u32 %v1245_v21, 16 }
 0x27f   : > { %v1272_v22 = vrot.slane %v1264_v18, %v3988_v35  ;;  %v1279_v23 = vrot.slane %v1265_v19, %v3988_v35  ;;  %v1294_v45 = vshrl.u32 %v1246_v34, 16 }
 0x280   : > { %v1310_v48 = vshrl.u32 %v1247_v40, 16 }
 0x281   : > { %v1300_v24 = vpack.i.b16 %v1279_v23, %v1245_v21  ;;  %v1284_v25 = vpack.i.b16 %v1272_v22, %v1238_v20  ;;  %v1287_v28 = vshrl.u32 %v1272_v22, 16  ;;  %v1280_v31 = vcombine.high %v1272_v22, %v3640_v30 }
 0x282   : > { %v1281_v38 = vcombine.high %v1279_v23, %v3640_v30  ;;  %v1303_v39 = vshrl.u32 %v1279_v23, 16 }
 0x283   : > { %1378 = vxpose.xlu1.c.b16.start.end [1/1] (short) (narrow) %v1300_v24, 16  ;;  %1314 = vxpose.xlu0.c.b16.start.end [1/1] (short) (narrow) %v1284_v25, 16  ;;  %v1288_v36 = vpack.i.b16 %v1287_v28, %v1286_v33  ;;  %v1292_v37 = vpack.i.b16 %v1280_v31, %v1246_v34  ;;  %v1295_v44 = vshrl.u32 %v1280_v31, 16 }
 0x284   : > { %v1308_v42 = vpack.i.b16 %v1281_v38, %v1247_v40  ;;  %v1304_v43 = vpack.i.b16 %v1303_v39, %v1302_v41  ;;  %v1311_v47 = vshrl.u32 %v1281_v38, 16 }
 0x285   : > { %v1296_v46 = vpack.i.b16 %v1295_v44, %v1294_v45 }
 0x286   : > { %v1312_v49 = vpack.i.b16 %v1311_v47, %v1310_v48 }
 0x287   : > { %1330 = vxpose.xlu1.c.b16.start.end [1/1] (short) (narrow) %v1288_v36, 16  ;;  %1346 = vxpose.xlu0.c.b16.start.end [1/1] (short) (narrow) %v1292_v37, 16 }
 0x288   : > { %v769_v50 = vpop.permute.xlu1 %768 }
 0x289   : > { %v774_v55 = vcombine.low %v4006_v61, %v769_v50  ;;  %v775_v56 = vcombine.high %v4006_v61, %v769_v50 }
 0x28b   : > { %1410 = vxpose.xlu1.c.b16.start.end [1/1] (short) (narrow) %v1308_v42, 16  ;;  %1394 = vxpose.xlu0.c.b16.start.end [1/1] (short) (narrow) %v1304_v43, 16  ;;  %v782_v58 = vrot.slane %v774_v55, %v3976_v29 }
 0x28c   : > { %v772_v51 = vpop.permute.xlu1 %771 }
 0x28d   : > { %v766_v52 = vpop.permute.xlu0 %765 }
 0x28e   : > { %v790_v53 = vcombine.low %v766_v52, %v772_v51  ;;  %v791_v54 = vcombine.high %v766_v52, %v772_v51 }
 0x28f   : > { %936 = vrot.lane.b32.xlu1 %v3964_v15, %s3641_s21  ;;  %1362 = vxpose.xlu0.c.b16.start.end [1/1] (short) (narrow) %v1296_v46, 16 }
 0x290   : > { %v798_v15 = vrot.slane %v790_v53, %v3976_v29  ;;  %v805_v57 = vrot.slane %v791_v54, %v3976_v29 }
 0x292   : > { %v806_v59 = vcombine.low %v782_v58, %v798_v15  ;;  %v807_v60 = vcombine.high %v782_v58, %v798_v15 }
 0x293   : > { %940 = vrot.lane.b32.xlu1 %v3982_v32, %s3641_s21  ;;  %1426 = vxpose.xlu0.c.b16.start.end [1/1] (short) (narrow) %v1312_v49, 16  ;;  %v789_v32 = vrot.slane %v775_v56, %v3976_v29 }
 0x294   : > { %v814_v2 = vrot.slane %v806_v59, %v3988_v35  ;;  %v821_v3 = vrot.slane %v807_v60, %v3988_v35 }
 0x295   : > { %v823_v62 = vcombine.high %v789_v32, %v805_v57 }
 0x296   : > { %v838_v7 = vcombine.high %v814_v2, %v3633_v0  ;;  %v839_v8 = vcombine.high %v821_v3, %v3633_v0 }
 0x297   : > { %v837_v4 = vrot.slane %v823_v62, %v3988_v35 }
 0x299   : > { %v841_v10 = vcombine.high %v837_v4, %v3633_v0  ;;  %v3081_v19 = vpack.c.bf16 %v837_v4, %v821_v3 }
 0x29b   : > { %v3083_v16 = vpack.c.bf16 %v841_v10, %v839_v8  ;;  %v1039_v31 = vrot.slane %v3081_v19, %v3976_v29 }
 0x29c   : > { %938 = vrot.lane.b32.xlu0 %v3974_v27, %s3641_s21  ;;  %v822_v27 = vcombine.low %v789_v32, %v805_v57 }
 0x29d   : > { %v1064_v23 = vrot.slane %v3083_v16, %v3976_v29 }
 0x29e   : > { %v830_v61 = vrot.slane %v822_v27, %v3988_v35 }
 0x2a0   : > { %v840_v9 = vcombine.high %v830_v61, %v3633_v0  ;;  %v3080_v18 = vpack.c.bf16 %v830_v61, %v814_v2 }
 0x2a2   : > { %v3082_v14 = vpack.c.bf16 %v840_v9, %v838_v7  ;;  %v1031_v28 = vrot.slane %v3080_v18, %v3976_v29 }
 0x2a4   : > { %v1056_v22 = vrot.slane %v3082_v14, %v3976_v29  ;;  %v1040_v40 = vcombine.low %v1031_v28, %v1039_v31 }
 0x2a6   : > { %v1065_v37 = vcombine.low %v1056_v22, %v1064_v23  ;;  %v1047_v45 = vrot.slane %v1040_v40, %v3988_v35 }
 0x2a8   : > { %v1072_v43 = vrot.slane %v1065_v37, %v3988_v35  ;;  %v1077_v58 = vshrl.u32 %v1047_v45, 16 }
 0x2aa   : > { %v1078_v51 = vshrl.u32 %v1072_v43, 16  ;;  %v1076_v57 = vpack.i.b16 %v1072_v43, %v1047_v45  ;;  %v1073_v27 = vcombine.high %v1072_v43, %v3640_v30 }
 0x2ac   : > { %v1079_v60 = vpack.i.b16 %v1078_v51, %v1077_v58 }
 0x2e9   : > { %v1386_v63 = vpop.trf.xlu1  ;;  %v1322_v1 = vpop.trf.xlu0 }
 0x2ea   : > { %v1442_v17 = vcombine.low %v1322_v1, %v1386_v63  ;;  %v1048_v63 = vcombine.high %v1047_v45, %v3640_v30  ;;  %v1084_v1 = vshrl.u32 %v1073_v27, 16 }
 0x2ec   : > { %v1449_v24 = vrot.slane %v1442_v17, %v3976_v29  ;;  %v1082_v2 = vpack.i.b16 %v1073_v27, %v1048_v63  ;;  %v1083_v3 = vshrl.u32 %v1048_v63, 16 }
 0x2ed   : > { %v1338_v5 = vpop.trf.xlu1  ;;  %v1354_v6 = vpop.trf.xlu0 }
 0x2ee   : > { %v1085_v61 = vpack.i.b16 %v1084_v1, %v1083_v3 }
 0x2f1   : > { %v1418_v11 = vpop.trf.xlu1  ;;  %v1402_v12 = vpop.trf.xlu0 }
 0x2f2   : > { %v1450_v13 = vcombine.low %v1354_v6, %v1418_v11  ;;  %v1467_v25 = vcombine.low %v1338_v5, %v1402_v12 }
 0x2f4   : > { %v1457_v20 = vrot.slane %v1450_v13, %v3976_v29  ;;  %v1474_v38 = vrot.slane %v1467_v25, %v3976_v29 }
 0x2f5   : > { %v1370_v21 = vpop.trf.xlu0 }
 0x2f6   : > { %v1458_v33 = vcombine.low %v1449_v24, %v1457_v20 }
 0x2f8   : > { %v1465_v41 = vrot.slane %v1458_v33, %v3988_v35 }
 0x2f9   : > { %v1434_v34 = vpop.trf.xlu0 }
 0x2fa   : > { %v1475_v36 = vcombine.low %v1370_v21, %v1434_v34  ;;  %v1466_v46 = vcombine.high %v1465_v41, %v3640_v30  ;;  %v1495_v48 = vshrl.u32 %v1465_v41, 16 }
 0x2fc   : > { %v1482_v39 = vrot.slane %v1475_v36, %v3976_v29  ;;  %v1501_v56 = vshrl.u32 %v1466_v46, 16 }
 0x2fe   : > { %v1483_v42 = vcombine.low %v1474_v38, %v1482_v39 }
 0x300   : > { %v1490_v44 = vrot.slane %v1483_v42, %v3988_v35 }
 0x301   : > { %v937_v25 = vpop.permute.xlu1 %936 }
 0x302   : > { %v1494_v47 = vpack.i.b16 %v1490_v44, %v1465_v41  ;;  %v1496_v49 = vshrl.u32 %v1490_v44, 16  ;;  %v1491_v50 = vcombine.high %v1490_v44, %v3640_v30 }
 0x304   : > { %v1510_v52 = vsel %vm1508_vm2, %v1494_v47, 0  ;;  %v1497_v53 = vpack.i.b16 %v1496_v49, %v1495_v48  ;;  %v1500_v54 = vpack.i.b16 %v1491_v50, %v1466_v46  ;;  %v1502_v55 = vshrl.u32 %v1491_v50, 16 }
 0x305   : > { %3166 = vmatpush3.bf16.msra.mxu0 %v1510_v52  ;;  %v941_v28 = vpop.permute.xlu1 %940 }
 0x306   : > { %v1556_v15 = vsel %vm1508_vm2, %v1497_v53, 0  ;;  %3177 = vmatprep.subr.bf16.mxu0 %v3633_v0  ;;  %v1503_v32 = vpack.i.b16 %v1502_v55, %v1501_v56  ;;  %v1602_v59 = vsel %vm1508_vm2, %v1500_v54, 0  ;;  %v948_v33 = vcombine.low %v937_v25, %v941_v28 }
 0x307   : > { %3172 = vmatpush3.bf16.msra.mxu1 %v1556_v15  ;;  %v949_v37 = vcombine.high %v937_v25, %v941_v28 }
 0x308   : > { %3168 = vmatmul.mubr.msk.bf16.vlgmr.msra.gmra.mrb[0].mxu0 %vm1504_vm3, %v1076_v57  ;;  %3183 = vmatprep.subr.bf16.mxu1 %v3633_v0  ;;  %v1648_v62 = vsel %vm1508_vm2, %v1503_v32, 0  ;;  %v956_v40 = vrot.slane %v948_v33, %v3976_v29 }
 0x309   : > { %3178 = vmatpush3.bf16.msra.mxu0 %v1602_v59  ;;  %3179 = vmatprep.mubr.msk.bf16.mxu0 %vm3634_vm0, %v3633_v0  ;;  %v963_v42 = vrot.slane %v949_v37, %v3976_v29 }
 0x30a   : > { %3174 = vmatmul.mubr.msk.bf16.vlgmr.msra.gmra.mrb[8].mxu1 %vm1504_vm3, %v1079_v60  ;;  %3189 = vmatprep.subr.bf16.mxu0 %v3633_v0 }
 0x30b   : > { %3184 = vmatpush3.bf16.msra.mxu1 %v1648_v62  ;;  %3185 = vmatprep.mubr.msk.bf16.mxu1 %vm3634_vm0, %v3633_v0 }
 0x30c   : > { %3195 = vmatprep.subr.bf16.mxu1 %v3633_v0 }
 0x30e   : > { %v939_v34 = vpop.permute.xlu0 %938 }
 0x310   : > { %3180 = vmatmul.mubr.msk.bf16.vlgmr.msra.gmra.mrb[4].mxu0 %vm1504_vm3, %v1082_v2 }
 0x311   : > { %3191 = vmatprep.mubr.msk.bf16.mxu0 %vm3634_vm0, %v3633_v0 }
 0x312   : > { %3186 = vmatmul.mubr.msk.bf16.vlgmr.msra.gmra.mrb[12].mxu1 %vm1504_vm3, %v1085_v61 }
 0x313   : > { %3197 = vmatprep.mubr.msk.bf16.mxu1 %vm3634_vm0, %v3633_v0 }
 0x3db   : > { %v1546_v4 = vpop.f32.mrb[0].mxu0 }
 0x3dc   : > { %v4082_v5 = vmul.f32 0.35355338, %v1546_v4  ;;  %v3169_v6 = vpop.f32.mrb[1].mxu0 }
 0x3dd   : > { %v1549_v7 = vpop.f32.mrb[2].mxu0  ;;  %v1592_v8 = vpop.f32.mrb[8].mxu1 }
 0x3de   : > { %v3170_v9 = vpop.f32.mrb[3].mxu0  ;;  %v3175_v10 = vpop.f32.mrb[9].mxu1  ;;  %v1694_v11 = vsel %vm1504_vm3, %v4082_v5, -inf  ;;  %v4102_v53 = vmul.f32 0.35355338, %v1592_v8 }
 0x3df   : > { %1695 = vmax.xlane.f32.xlu1 %v1694_v11  ;;  %v1595_v12 = vpop.f32.mrb[10].mxu1 }
 0x3e0   : > { %v3176_v13 = vpop.f32.mrb[11].mxu1  ;;  %v1697_v55 = vsel %vm1504_vm3, %v4102_v53, -inf }
 0x3e3   : > { %v1638_v14 = vpop.f32.mrb[4].mxu0 }
 0x3e4   : > { %v3181_v16 = vpop.f32.mrb[5].mxu0  ;;  %v4088_v23 = vmul.f32 0.35355338, %v1638_v14 }
 0x3e5   : > { %v1641_v17 = vpop.f32.mrb[6].mxu0  ;;  %v1684_v18 = vpop.f32.mrb[12].mxu1 }
 0x3e6   : > { %v3182_v19 = vpop.f32.mrb[7].mxu0  ;;  %v3187_v20 = vpop.f32.mrb[13].mxu1  ;;  %v1700_v24 = vsel %vm1504_vm3, %v4088_v23, -inf  ;;  %v4107_v58 = vmul.f32 0.35355338, %v1684_v18 }
 0x3e7   : > { %v1687_v21 = vpop.f32.mrb[14].mxu1 }
 0x3e8   : > { %v3188_v22 = vpop.f32.mrb[15].mxu1  ;;  %v1703_v32 = vsel %vm1504_vm3, %v4107_v58, -inf }
 0x3f0   : > { %942 = vrot.lane.b32.xlu1 %v3972_v26, %s3641_s21 }
 0x414   : > { %1701 = vmax.xlane.f32.xlu1 %v1700_v24 }
 0x46c   : > { %v4092_v31 = vpop.xlane.xlu1 %1695 }
 0x470   : > { %v943_v36 = vpop.permute.xlu1 %942 }
 0x471   : > { %v964_v38 = vcombine.low %v939_v34, %v943_v36  ;;  %v965_v39 = vcombine.high %v939_v34, %v943_v36 }
 0x473   : > { %v972_v26 = vrot.slane %v964_v38, %v3976_v29  ;;  %v979_v41 = vrot.slane %v965_v39, %v3976_v29 }
 0x475   : > { %v980_v43 = vcombine.low %v956_v40, %v972_v26  ;;  %v996_v45 = vcombine.low %v963_v42, %v979_v41  ;;  %v997_v50 = vcombine.high %v963_v42, %v979_v41  ;;  %v981_v56 = vcombine.high %v956_v40, %v972_v26 }
 0x476   : > { %v1706_v26 = vsub.f32 %v4082_v5, %v4092_v31 }
 0x477   : > { %v988_v44 = vrot.slane %v980_v43, %v3988_v35  ;;  %v1004_v49 = vrot.slane %v996_v45, %v3988_v35  ;;  %v1011_v52 = vrot.slane %v997_v50, %v3988_v35  ;;  %v995_v15 = vrot.slane %v981_v56, %v3988_v35 }
 0x479   : > { %v1016_v46 = vpack.c.bf16 %v988_v44, %v988_v44  ;;  %v1012_v47 = vcombine.high %v988_v44, %v3633_v0  ;;  %v1020_v51 = vpack.c.bf16 %v1004_v49, %v1004_v49  ;;  %v1022_v54 = vpack.c.bf16 %v1011_v52, %v1011_v52 }
 0x47a   : > { %v1018_v57 = vpack.c.bf16 %v995_v15, %v995_v15  ;;  %v1013_v59 = vcombine.high %v995_v15, %v3633_v0  ;;  %v1014_v27 = vcombine.high %v1004_v49, %v3633_v0  ;;  %v1015_v63 = vcombine.high %v1011_v52, %v3633_v0 }
 0x47b   : > { %1742 = vxpose.xlu0.c.b16.start.end [1/1] (short) (narrow) %v1016_v46, 16  ;;  %v1017_v48 = vpack.c.bf16 %v1012_v47, %v1012_v47 }
 0x47c   : > { %v1019_v60 = vpack.c.bf16 %v1013_v59, %v1013_v59  ;;  %v1021_v62 = vpack.c.bf16 %v1014_v27, %v1014_v27  ;;  %v1023_v1 = vpack.c.bf16 %v1015_v63, %v1015_v63 }
 0x47d   : > { %1758 = vxpose.xlu1.c.b16.start.end [1/1] (short) (narrow) %v1017_v48, 16  ;;  %v1710_v48 = vmul.f32 1.442695, %v1706_v26 }
 0x47f   : > { %3373 = vpow2.f32 %v1710_v48 }
 0x481   : > { %1806 = vxpose.xlu1.c.b16.start.end [1/1] (short) (narrow) %v1020_v51, 16 }
 0x485   : > { %1838 = vxpose.xlu1.c.b16.start.end [1/1] (short) (narrow) %v1022_v54, 16 }
 0x488   : > { %1698 = vmax.xlane.f32.xlu0 %v1697_v55 }
 0x489   : > { %v3374_v15 = vpop.eup %3373 }
 0x4a1   : > { %v1702_v2 = vpop.xlane.xlu1 %1701 }
 0x4a2   : > { %v1708_v49 = vsub.f32 %v4088_v23, %v1702_v2 }
 0x4a4   : > { %v1714_v55 = vmul.f32 1.442695, %v1708_v49 }
 0x4b5   : > { %1774 = vxpose.xlu0.c.b16.start.end [1/1] (short) (narrow) %v1018_v57, 16  ;;  %v1718_v57 = vsel %vm1504_vm3, %v3374_v15, 0.0 }
 0x4c2   : > { %1704 = vmax.xlane.f32.xlu0 %v1703_v32 }
 0x4e1   : > { %v1750_v3 = vpop.trf.xlu0 }
 0x4e3   : > { %v1766_v61 = vpop.trf.xlu1 }
 0x4e7   : > { %v1814_v6 = vpop.trf.xlu1 }
 0x4e8   : > { %v1870_v10 = vcombine.low %v1750_v3, %v1814_v6 }
 0x4ea   : > { %v1877_v13 = vrot.slane %v1870_v10, %v3976_v29 }
 0x4eb   : > { %v1846_v9 = vpop.trf.xlu1 }
 0x4ef   : > { %1790 = vxpose.xlu0.c.b16.start.end [1/1] (short) (narrow) %v1019_v60, 16 }
 0x4f3   : > { %1822 = vxpose.xlu0.c.b16.start.end [1/1] (short) (narrow) %v1021_v62, 16 }
 0x4f7   : > { %1854 = vxpose.xlu0.c.b16.start.end [1/1] (short) (narrow) %v1023_v1, 16 }
 0x515   : > { %v1699_v4 = vpop.xlane.xlu0 %1698 }
 0x516   : > { %v1707_v44 = vsub.f32 %v4102_v53, %v1699_v4 }
 0x518   : > { %v1712_v52 = vmul.f32 1.442695, %v1707_v44 }
 0x51a   : > { %3375 = vpow2.f32 %v1712_v52 }
 0x51b   : > { %v1782_v7 = vpop.trf.xlu0  ;;  %3377 = vpow2.f32 %v1714_v55 }
 0x51c   : > { %v1878_v11 = vcombine.low %v1782_v7, %v1846_v9 }
 0x51e   : > { %v1885_v14 = vrot.slane %v1878_v11, %v3976_v29 }
 0x520   : > { %v1886_v18 = vcombine.low %v1877_v13, %v1885_v14  ;;  %v1887_v34 = vcombine.high %v1877_v13, %v1885_v14 }
 0x522   : > { %v1894_v24 = vrot.slane %v1886_v18, %v3988_v35  ;;  %v1901_v47 = vrot.slane %v1887_v34, %v3988_v35 }
 0x524   : > { %v1942_v36 = vshrl.u32 %v1894_v24, 16  ;;  %v1902_v39 = vcombine.high %v1894_v24, %v3640_v30  ;;  %v1958_v54 = vshrl.u32 %v1901_v47, 16  ;;  %v3376_v23 = vpop.eup %3375  ;;  %v1903_v63 = vcombine.high %v1901_v47, %v3640_v30 }
 0x525   : > { %v3378_v32 = vpop.eup %3377 }
 0x526   : > { %v1950_v46 = vshrl.u32 %v1902_v39, 16  ;;  %v1724_v60 = vsel %vm1504_vm3, %v3378_v32, 0.0  ;;  %v1966_v3 = vshrl.u32 %v1903_v63, 16 }
 0x54f   : > { %v1705_v8 = vpop.xlane.xlu0 %1704 }
 0x550   : > { %v1709_v5 = vsub.f32 %v4107_v58, %v1705_v8  ;;  %v1721_v58 = vsel %vm1504_vm3, %v3376_v23, 0.0 }
 0x552   : > { %v1716_v56 = vmul.f32 1.442695, %v1709_v5 }
 0x554   : > { %3379 = vpow2.f32 %v1716_v56 }
 0x555   : > { %v1798_v12 = vpop.trf.xlu0 }
 0x559   : > { %v1830_v16 = vpop.trf.xlu0 }
 0x55a   : > { %v1904_v17 = vcombine.low %v1766_v61, %v1830_v16 }
 0x55c   : > { %v1911_v21 = vrot.slane %v1904_v17, %v3976_v29 }
 0x55d   : > { %v1862_v19 = vpop.trf.xlu0 }
 0x55e   : > { %v1912_v20 = vcombine.low %v1798_v12, %v1862_v19  ;;  %v3380_v59 = vpop.eup %3379 }
 0x55f   : > { %v1727_v27 = vsel %vm1504_vm3, %v3380_v59, 0.0 }
 0x560   : > { %v1919_v22 = vrot.slane %v1912_v20, %v3976_v29 }
 0x562   : > { %v1920_v25 = vcombine.low %v1911_v21, %v1919_v22  ;;  %v1921_v28 = vcombine.high %v1911_v21, %v1919_v22 }
 0x564   : > { %v1928_v33 = vrot.slane %v1920_v25, %v3988_v35  ;;  %v1935_v43 = vrot.slane %v1921_v28, %v3988_v35 }
 0x566   : > { %v1940_v37 = vpack.i.b16 %v1928_v33, %v1894_v24  ;;  %v1943_v38 = vshrl.u32 %v1928_v33, 16  ;;  %v1936_v40 = vcombine.high %v1928_v33, %v3640_v30  ;;  %v1959_v51 = vshrl.u32 %v1935_v43, 16 }
 0x567   : > { %v1956_v31 = vpack.i.b16 %v1935_v43, %v1901_v47  ;;  %v1937_v62 = vcombine.high %v1935_v43, %v3640_v30 }
 0x568   : > { %1970 = vxpose.xlu1.c.b16.start.end [1/1] (short) (narrow) %v1940_v37, 16  ;;  %v1944_v41 = vpack.i.b16 %v1943_v38, %v1942_v36  ;;  %v1951_v42 = vshrl.u32 %v1936_v40, 16  ;;  %v1948_v45 = vpack.i.b16 %v1936_v40, %v1902_v39  ;;  %v1960_v53 = vpack.i.b16 %v1959_v51, %v1958_v54 }
 0x569   : > { %v1967_v1 = vshrl.u32 %v1937_v62, 16  ;;  %v1964_v2 = vpack.i.b16 %v1937_v62, %v1903_v63 }
 0x56a   : > { %1986 = vxpose.xlu0.c.b16.start.end [1/1] (short) (narrow) %v1944_v41, 16  ;;  %v1952_v50 = vpack.i.b16 %v1951_v42, %v1950_v46 }
 0x56b   : > { %v1968_v61 = vpack.i.b16 %v1967_v1, %v1966_v3 }
 0x56c   : > { %2002 = vxpose.xlu1.c.b16.start.end [1/1] (short) (narrow) %v1948_v45, 16 }
 0x56e   : > { %2018 = vxpose.xlu0.c.b16.start.end [1/1] (short) (narrow) %v1952_v50, 16 }
 0x570   : > { %2034 = vxpose.xlu1.c.b16.start.end [1/1] (short) (narrow) %v1956_v31, 16 }
 0x572   : > { %2050 = vxpose.xlu0.c.b16.start.end [1/1] (short) (narrow) %v1960_v53, 16 }
 0x57d   : > { %1719 = vadd.xlane.f32.xlu1 %v1718_v57 }
 0x57f   : > { %1722 = vadd.xlane.f32.xlu0 %v1721_v58 }
 0x581   : > { %1725 = vadd.xlane.f32.xlu1 %v1724_v60 }
 0x583   : > { %1728 = vadd.xlane.f32.xlu0 %v1727_v27 }
 0x5ae   : > { %2066 = vxpose.xlu1.c.b16.start.end [1/1] (short) (narrow) %v1964_v2, 16 }
 0x5b0   : > { %2082 = vxpose.xlu0.c.b16.start.end [1/1] (short) (narrow) %v1968_v61, 16 }
 0x5ce   : > { %v1978_v4 = vpop.trf.xlu1 }
 0x5d0   : > { %v1994_v6 = vpop.trf.xlu0 }
 0x5d2   : > { %v2010_v7 = vpop.trf.xlu1 }
 0x5d4   : > { %v2026_v8 = vpop.trf.xlu0 }
 0x5d6   : > { %v2042_v9 = vpop.trf.xlu1 }
 0x5d7   : > { %v2098_v16 = vcombine.low %v1978_v4, %v2042_v9 }
 0x5d8   : > { %v2058_v10 = vpop.trf.xlu0 }
 0x5d9   : > { %v2123_v19 = vcombine.low %v1994_v6, %v2058_v10  ;;  %v2105_v25 = vrot.slane %v2098_v16, %v3976_v29 }
 0x5db   : > { %v2130_v38 = vrot.slane %v2123_v19, %v3976_v29 }
 0x60a   : > { %v1720_v11 = vpop.xlane.xlu1 %1719 }
 0x60b   : > { %3381 = vrcp.f32 %v1720_v11 }
 0x60c   : > { %v1723_v12 = vpop.xlane.xlu0 %1722 }
 0x60d   : > { %3383 = vrcp.f32 %v1723_v12 }
 0x60e   : > { %v1726_v13 = vpop.xlane.xlu1 %1725 }
 0x60f   : > { %3385 = vrcp.f32 %v1726_v13 }
 0x610   : > { %v1729_v14 = vpop.xlane.xlu0 %1728 }
 0x611   : > { %3387 = vrcp.f32 %v1729_v14 }
 0x614   : > { %v2074_v17 = vpop.trf.xlu1 }
 0x615   : > { %v3382_v18 = vpop.eup %3381  ;;  %v2106_v20 = vcombine.low %v2010_v7, %v2074_v17 }
 0x616   : > { %v2090_v21 = vpop.trf.xlu0  ;;  %v1734_v22 = vmul.f32 %v3382_v18, %v3374_v15 }
 0x617   : > { %v3384_v24 = vpop.eup %3383  ;;  %v2113_v28 = vrot.slane %v2106_v20, %v3976_v29  ;;  %v2131_v33 = vcombine.low %v2026_v8, %v2090_v21 }
 0x618   : > { %v1738_v34 = vpack.c.bf16 %v1734_v22, %v1734_v22  ;;  %v1735_v36 = vmul.f32 %v3384_v24, %v3376_v23 }
 0x619   : > { %v3386_v37 = vpop.eup %3385  ;;  %v2114_v39 = vcombine.low %v2105_v25, %v2113_v28  ;;  %v2138_v40 = vrot.slane %v2131_v33, %v3976_v29 }
 0x61a   : > { %v2164_v26 = vsel %vm1504_vm3, %v1738_v34, 0  ;;  %v1739_v41 = vpack.c.bf16 %v1735_v36, %v1735_v36  ;;  %v1736_v42 = vmul.f32 %v3386_v37, %v3378_v32  ;;  %v3365_v34 = vld [vmem:[#allocation5] sm:$0xff]  }
 0x61b   : > { %v3388_v43 = vpop.eup %3387  ;;  %v2121_v44 = vrot.slane %v2114_v39, %v3988_v35  ;;  %v2139_v45 = vcombine.low %v2130_v38, %v2138_v40  ;;  %3190 = vmatpush3.bf16.xpose.msra.mxu0 %v2164_v26 }
 0x61c   : > { %v2210_v46 = vsel %vm1504_vm3, %v1739_v41, 0  ;;  %3201 = vmatprep.subr.bf16.mxu0 %v3633_v0  ;;  %v1737_v47 = vmul.f32 %v3388_v43, %v3380_v59  ;;  %v1740_v49 = vpack.c.bf16 %v1736_v42, %v1736_v42  ;;  %v3366_v43 = vld [vmem:[#allocation5 + $0x8] sm:$0xff]  }
 0x61d   : > { %v2146_v48 = vrot.slane %v2139_v45, %v3988_v35  ;;  %3196 = vmatpush3.bf16.xpose.msra.mxu1 %v2210_v46  ;;  %v2151_v50 = vshrl.u32 %v2121_v44, 16  ;;  %v2122_v53 = vcombine.high %v2121_v44, %v3640_v30 }
 0x61e   : > { %3207 = vmatprep.subr.bf16.mxu1 %v3633_v0  ;;  %v1741_v5 = vpack.c.bf16 %v1737_v47, %v1737_v47  ;;  %v2256_v55 = vsel %vm1504_vm3, %v1740_v49, 0 }
 0x61f   : > { %v2150_v51 = vpack.i.b16 %v2146_v48, %v2121_v44  ;;  %v2152_v52 = vshrl.u32 %v2146_v48, 16  ;;  %v2147_v54 = vcombine.high %v2146_v48, %v3640_v30  ;;  %v2157_v23 = vshrl.u32 %v2122_v53, 16 }
 0x620   : > { %v2302_v56 = vsel %vm1504_vm3, %v1741_v5, 0 }
 0x621   : > { %v2153_v31 = vpack.i.b16 %v2152_v52, %v2151_v50  ;;  %v2158_v15 = vshrl.u32 %v2147_v54, 16  ;;  %v2156_v57 = vpack.i.b16 %v2147_v54, %v2122_v53 }
 0x622   : > { %3192 = vmatmul.mubr.msk.bf16.vlgmr.msra.gmra.mrb[8].mxu0 %vm1504_vm3, %v2150_v51 }
 0x623   : > { %3202 = vmatpush3.bf16.xpose.msra.mxu0 %v2256_v55  ;;  %3203 = vmatprep.mubr.msk.bf16.mxu0 %vm3634_vm0, %v3633_v0  ;;  %v2159_v32 = vpack.i.b16 %v2158_v15, %v2157_v23 }
 0x624   : > { %3198 = vmatmul.mubr.msk.bf16.vlgmr.msra.gmra.mrb[16].mxu1 %vm1504_vm3, %v2153_v31  ;;  %3213 = vmatprep.subr.bf16.mxu0 %v3633_v0 }
 0x625   : > { %3208 = vmatpush3.bf16.xpose.msra.mxu1 %v2302_v56  ;;  %3209 = vmatprep.mubr.msk.bf16.mxu1 %vm3634_vm0, %v3633_v0 }
 0x626   : > { %3221 = vmatprep.subr.bf16.mxu1 %v3633_v0 }
 0x62a   : > { %3204 = vmatmul.mubr.msk.bf16.vlgmr.msra.gmra.mrb[12].mxu0 %vm1504_vm3, %v2156_v57 }
 0x62b   : > { %3217 = vmatprep.mubr.msk.bf16.mxu0 %vm3634_vm0, %v3633_v0  ;;  %3214 = vmatpush3.bf16.msra.mxu0 %v3365_v34  ;;  %v3100_v34 = vld [vmem:[%s4289_s11] ss:$0 sm:$0xff] }
 0x62c   : > { %3210 = vmatmul.mubr.msk.bf16.vlgmr.msra.gmra.mrb[20].mxu1 %vm1504_vm3, %v2159_v32  ;;  %3215 = vmatprep.subr.bf16.mxu0 %v3633_v0 }
 0x62d   : > { %3225 = vmatprep.mubr.msk.bf16.mxu1 %vm3634_vm0, %v3633_v0 }
 0x62f   : > { %3216 = vmatpush3.bf16.msra.mxu0 %v3366_v43 }
 0x630   : > { %3229 = vmatprep.subr.bf16.mxu0 %v3633_v0 }
 0x6f5   : > { %v2200_v30 = vpop.f32.mrb[8].mxu0 }
 0x6f6   : > { %2344 = vxpose.xlu1.b32.start.end [1/1] (short) (narrow) %v2200_v30, 8  ;;  %v3193_v58 = vpop.f32.mrb[9].mxu0 }
 0x6f7   : > { %v2203_v59 = vpop.f32.mrb[10].mxu0  ;;  %v2246_v60 = vpop.f32.mrb[16].mxu1 }
 0x6f8   : > { %v3194_v27 = vpop.f32.mrb[11].mxu0  ;;  %2376 = vxpose.xlu0.b32.start.end [1/1] (short) (narrow) %v2246_v60, 8  ;;  %v3199_v62 = vpop.f32.mrb[17].mxu1  ;;  %v3094_v59 = vld [vmem:[#allocation7] ss:$0 sm:$0xff] }
 0x6f9   : > { %v2249_v63 = vpop.f32.mrb[18].mxu1 }
 0x6fa   : > { %v3200_v1 = vpop.f32.mrb[19].mxu1 }
 0x6fd   : > { %v2292_v2 = vpop.f32.mrb[12].mxu0 }
 0x6fe   : > { %v3205_v3 = vpop.f32.mrb[13].mxu0  ;;  %2408 = vxpose.xlu0.b32.start.end [1/1] (short) (narrow) %v2292_v2, 8  ;;  %v3393_v2 = vld [vmem:[%s3937_s23] sm:$0xff] }
 0x6ff   : > { %v2295_v61 = vpop.f32.mrb[14].mxu0  ;;  %v2338_v4 = vpop.f32.mrb[20].mxu1 }
 0x700   : > { %v3206_v6 = vpop.f32.mrb[15].mxu0  ;;  %2440 = vxpose.xlu1.b32.start.end [1/1] (short) (narrow) %v2338_v4, 8  ;;  %v3211_v7 = vpop.f32.mrb[21].mxu1 }
 0x701   : > { %v2341_v8 = vpop.f32.mrb[22].mxu1 }
 0x702   : > { %v3212_v9 = vpop.f32.mrb[23].mxu1 }
 0x776   : > { %v2360_v11 = vpop.trf.xlu1 }
 0x778   : > { %v2392_v10 = vpop.trf.xlu0 }
 0x77e   : > { %v2424_v12 = vpop.trf.xlu0 }
 0x77f   : > { %v2472_v13 = vcombine.low %v2360_v11, %v2424_v12  ;;  %v2473_v14 = vcombine.high %v2360_v11, %v2424_v12  ;;  %v3368_v11 = vld [vmem:[%s4288_s10 + $0x8] sm:$0xff]   ;;  %v3369_v12 = vld [vmem:[%s4290_s12] sm:$0xff]  }
 0x780   : > { %v2456_v16 = vpop.trf.xlu1 }
 0x781   : > { %v2488_v17 = vcombine.low %v2392_v10, %v2456_v16  ;;  %v2489_v18 = vcombine.high %v2392_v10, %v2456_v16  ;;  %v2480_v19 = vrot.slane %v2472_v13, %v3976_v29  ;;  %v2487_v20 = vrot.slane %v2473_v14, %v3976_v29  ;;  %v3367_v10 = vld [vmem:[%s4288_s10] sm:$0xff]   ;;  %v3370_v13 = vld [vmem:[%s4290_s12 + $0x8] sm:$0xff]  }
 0x782   : > { %3222 = vmatpush3.bf16.msra.mxu1 %v3367_v10 }
 0x783   : > { %v2496_v21 = vrot.slane %v2488_v17, %v3976_v29  ;;  %v2503_v22 = vrot.slane %v2489_v18, %v3976_v29  ;;  %3223 = vmatprep.subr.bf16.mxu1 %v3633_v0 }
 0x785   : > { %v2504_v24 = vcombine.low %v2480_v19, %v2496_v21  ;;  %v2505_v25 = vcombine.high %v2480_v19, %v2496_v21  ;;  %v2520_v28 = vcombine.low %v2487_v20, %v2503_v22  ;;  %v2521_v33 = vcombine.high %v2487_v20, %v2503_v22  ;;  %v3098_v19 = vld [vmem:[#allocation8] ss:$0 sm:$0xff]  ;;  %v3099_v21 = vld [vmem:[#allocation10] ss:$0 sm:$0xff] }
 0x786   : > { %3224 = vmatpush3.bf16.msra.mxu1 %v3368_v11 }
 0x787   : > { %v2512_v36 = vrot.slane %v2504_v24, %v3988_v35  ;;  %v2519_v37 = vrot.slane %v2505_v25, %v3988_v35  ;;  %v2528_v38 = vrot.slane %v2520_v28, %v3988_v35  ;;  %v2535_v39 = vrot.slane %v2521_v33, %v3988_v35  ;;  %v3371_v28 = vld [vmem:[%s4290_s12 + $0x10] sm:$0xff]   ;;  %v3372_v33 = vld [vmem:[%s4290_s12 + $0x18] sm:$0xff]  }
 0x789   : > { %v2540_v40 = vcombine.low %v2512_v36, %v2519_v37  ;;  %v3092_v26 = vcombine.high %v2512_v36, %v2519_v37  ;;  %v2556_v41 = vcombine.low %v2528_v38, %v2535_v39  ;;  %v3093_v42 = vcombine.high %v2528_v38, %v2535_v39 }
 0x78b   : > { %v2547_v44 = vrot.slane %v2540_v40, %v3976_v29  ;;  %v2555_v45 = vrot.slane %v3092_v26, %v3976_v29  ;;  %v2563_v46 = vrot.slane %v2556_v41, %v3976_v29  ;;  %v2571_v47 = vrot.slane %v3093_v42, %v3976_v29 }
 0x78d   : > { %v2573_v48 = vcombine.high %v2547_v44, %v2555_v45  ;;  %v2589_v49 = vcombine.high %v2563_v46, %v2571_v47  ;;  %v2572_v50 = vcombine.low %v2547_v44, %v2555_v45  ;;  %v2588_v51 = vcombine.low %v2563_v46, %v2571_v47 }
 0x78f   : > { %v2587_v52 = vrot.slane %v2573_v48, %v3988_v35  ;;  %v2603_v5 = vrot.slane %v2589_v49, %v3988_v35  ;;  %v2580_v31 = vrot.slane %v2572_v50, %v3988_v35  ;;  %v2596_v54 = vrot.slane %v2588_v51, %v3988_v35 }
 0x791   : > { %v2606_v55 = vcombine.low %v2587_v52, %v2603_v5  ;;  %v2605_v53 = vcombine.high %v2580_v31, %v2596_v54  ;;  %v2604_v56 = vcombine.low %v2580_v31, %v2596_v54  ;;  %v2607_v29 = vcombine.high %v2587_v52, %v2603_v5 }
 0x793   : > { %2613 = vrot.lane.b32.xlu1 %v2606_v55, %s3642_s0  ;;  %2609 = vrot.lane.b32.xlu0 %v2605_v53, %s3643_s30  ;;  %s4340_s0 = sld [smem:[#allocation28_spill]] }
 0x797   : > { %2617 = vrot.lane.b32.xlu1 %v2607_v29, %s3644_s19  ;;  %s4336_s19 = sld [smem:[#allocation17_spill]] }
 0x799   : > { %s4230_s30 = scalar_lea.hbm %s4340_s0, %s3113_s22 }
 0x79d   : > { %s612_s17 = sand.u32 1, %s4336_s19  }
 0x79e   : > { %s3069_s14 = sshll.u32 %s612_s17, 3  ;;  %s2907_s19 = scalar_lea.sflag [#allocation4], %s612_s17 }
 0x79f   : > { %s614_s29 = scalar_lea.vmem [#allocation11], %s3069_s14  ;;  %s3538_s14 = sshll.u32 %s3645_s24, 4  ;;  %s3539_s14 = int_to_ptr.vmem [resolvable:$false] %s3538_s14 }
 0x7a0   : > { %s2921_s20 = sshll.u32 %s614_s29, 4  ;;  %s3540_s23 = scalar_lea.vmem %s3539_s14, 256  ;;  %s4232_s20 = int_to_ptr.vmem [resolvable:$true] %s2921_s20 }
 0x7a1   : > { %s3534_s25 = scalar_lea.vmem %s4232_s20, 128  ;;  %p3541_p2 = scmp.lt.s32.totalorder %s4232_s20, %s3539_s14 }
 0x7a2   : > { %p3535_p1 = scmp.ne.s32.totalorder %s4232_s20, %s3534_s25  ;;  %p3542_p3 = scmp.lt.s32.totalorder %s3540_s23, %s3534_s25 }
 0x7a4   : > { %p3536_p11 = pnand %p3535_p1, %p4341_p10  ;;  %p3543_p5 = por %p3542_p3, %p3541_p2 }
 0x7a6   : > { %p3537_p0 = pneg %p3536_p11 }
 0x7a8   : > { %p3544_p6 = pnand %p3543_p5, %p3537_p0 }
 0x805   : > { %v2614_v15 = vpop.permute.xlu1 %2613  ;;  %v2610_v23 = vpop.permute.xlu0 %2609 }
 0x806   : > { %v2620_v57 = vsel %vm1504_vm3, %v2604_v56, %v2610_v23  ;;  %v3110_v56 = vld [vmem:[%s4338_s18] ss:$0 sm:$0xff] }
 0x807   : > { %v2622_v30 = vsel %vm2621_vm4, %v2620_v57, %v2614_v15  ;;  %v3111_v15 = vld [vmem:[%s4339_s26] ss:$0 sm:$0xff] }
 0x809   : > { %v2618_v32 = vpop.permute.xlu1 %2617 }
 0x80a   : > { %v2624_v35 = vsel %vm2623_vm5, %v2622_v30, %v2618_v32 }
 0x80b   : > { %v2625_v58 = vpack.c.bf16 %v2624_v35, %v2624_v35 }
 0x80d   : > { %3218 = vmatmul.mubr.msk.bf16.vlgmr.msra.gmra.mrb[16].mxu0 %vm654_vm1, %v2625_v58 }
 0x80e   : > { %3237 = vmatprep.mubr.msk.bf16.mxu0 %vm3634_vm0, %v3633_v0  ;;  %3230 = vmatpush3.bf16.msra.mxu0 %v3369_v12 }
 0x80f   : > { %3231 = vmatprep.subr.bf16.mxu0 %v3633_v0 }
 0x812   : > { %3232 = vmatpush3.bf16.msra.mxu0 %v3370_v13 }
 0x813   : > { %3233 = vmatprep.subr.bf16.mxu0 %v3633_v0 }
 0x816   : > { %3234 = vmatpush3.bf16.msra.mxu0 %v3371_v28 }
 0x817   : > { %3235 = vmatprep.subr.bf16.mxu0 %v3633_v0  ;;  %v3104_v0 = vld [vmem:[%s4291_s13] ss:$0 sm:$0xff] }
 0x81a   : > { %3236 = vmatpush3.bf16.msra.mxu0 %v3372_v33 }
 0x8e0   : > { %v2686_v60 = vpop.f32.mrb[16].mxu0 }
 0x8e1   : > { %v2687_v27 = vadd.f32 %v3094_v59, %v2686_v60  ;;  %v3219_v62 = vpop.f32.mrb[17].mxu0 }
 0x8e2   : > { %v2689_v63 = vpop.f32.mrb[18].mxu0 }
 0x8e3   : > { %v3220_v1 = vpop.f32.mrb[19].mxu0  ;;  %v2692_v3 = vadd.f32 %v3393_v2, %v2687_v27 }
 0x8e5   : > { %v2693_v61 = vsel %vm654_vm1, %v2692_v3, 0.0 }
 0x8e6   : > { %2694 = vadd.xlane.f32.xlu1 %v2693_v61 }
 0x973   : > { %v2695_v4 = vpop.xlane.xlu1 %2694 }
 0x974   : > { %v2697_v6 = vmul.f32 0.03125, %v2695_v4 }
 0x976   : > { %v2698_v7 = vsub.f32 %v2692_v3, %v2697_v6 }
 0x978   : > { %v2699_v8 = vmul.f32 %v2698_v7, %v2698_v7 }
 0x97a   : > { %v2700_v9 = vsel %vm654_vm1, %v2699_v8, 0.0 }
 0x97b   : > { %2701 = vadd.xlane.f32.xlu0 %v2700_v9 }
 0xa08   : > { %v2702_v14 = vpop.xlane.xlu0 %2701 }
 0xa09   : > { %v2703_v16 = vmul.f32 0.03125, %v2702_v14 }
 0xa0b   : > { %v2704_v17 = vadd.f32 1e-05, %v2703_v16 }
 0xa0d   : > { %3389 = vrsqrt.f32 %v2704_v17 }
 0xa17   : > { %v3390_v18 = vpop.eup %3389 }
 0xa18   : > { %v2706_v20 = vmul.f32 %v3390_v18, %v2698_v7 }
 0xa1a   : > { %v2714_v22 = vmul.f32 %v3098_v19, %v2706_v20 }
 0xa1c   : > { %v2722_v24 = vadd.f32 %v3099_v21, %v2714_v22 }
 0xa1e   : > { %v2723_v25 = vpack.c.bf16 %v2722_v24, %v2722_v24 }
 0xa20   : > { %3226 = vmatmul.mubr.msk.bf16.vlgmr.msra.gmra.mrb[24].mxu1 %vm654_vm1, %v2723_v25 }
 0xaf3   : > { %v2784_v36 = vpop.f32.mrb[24].mxu1 }
 0xaf4   : > { %v2785_v37 = vadd.f32 %v3100_v34, %v2784_v36  ;;  %v3227_v38 = vpop.f32.mrb[25].mxu1 }
 0xaf5   : > { %v2787_v39 = vpop.f32.mrb[26].mxu1 }
 0xaf6   : > { %v2790_v40 = vmax.f32 %v2785_v37, 0.0  ;;  %v3228_v26 = vpop.f32.mrb[27].mxu1 }
 0xaf8   : > { %v2791_v41 = vpack.c.bf16 %v2790_v40, %v2790_v40 }
 0xafa   : > { %3238 = vmatmul.mubr.msk.bf16.vlgmr.msra.gmra.mrb[20].mxu0 %vm2831_vm6, %v2791_v41 }
 0xbcd   : > { %v2869_v42 = vpop.f32.mrb[20].mxu0 }
 0xbce   : > { %v2870_v43 = vadd.f32 %v3104_v0, %v2869_v42  ;;  %v3239_v44 = vpop.f32.mrb[21].mxu0 }
 0xbcf   : > { %v2872_v45 = vpop.f32.mrb[22].mxu0 }
 0xbd0   : > { %v3240_v46 = vpop.f32.mrb[23].mxu0  ;;  %v2875_v47 = vadd.f32 %v2870_v43, %v2722_v24 }
 0xbd2   : > { %v2876_v48 = vsel %vm654_vm1, %v2875_v47, 0.0 }
 0xbd3   : > { %2877 = vadd.xlane.f32.xlu0 %v2876_v48 }
 0xc60   : > { %v2878_v49 = vpop.xlane.xlu0 %2877 }
 0xc61   : > { %v2879_v50 = vmul.f32 0.03125, %v2878_v49 }
 0xc63   : > { %v2880_v51 = vsub.f32 %v2875_v47, %v2879_v50 }
 0xc65   : > { %v2881_v52 = vmul.f32 %v2880_v51, %v2880_v51 }
 0xc67   : > { %v2882_v5 = vsel %vm654_vm1, %v2881_v52, 0.0 }
 0xc68   : > { %2883 = vadd.xlane.f32.xlu1 %v2882_v5 }
 0xcf5   : > { %v2884_v31 = vpop.xlane.xlu1 %2883 }
 0xcf6   : > { %v2885_v54 = vmul.f32 0.03125, %v2884_v31 }
 0xcf8   : > { %v2886_v55 = vadd.f32 1e-05, %v2885_v54 }
 0xcfa   : > { %3391 = vrsqrt.f32 %v2886_v55 }
 0xd04   : > { %v3392_v53 = vpop.eup %3391 }
 0xd05   : > { %v2888_v29 = vmul.f32 %v3392_v53, %v2880_v51 }
 0xd07   : > { %v2896_v23 = vmul.f32 %v3110_v56, %v2888_v29 }
 0xd09   : > { %v2904_v57 = vadd.f32 %v3111_v15, %v2896_v23 }
 0xd0b   : > { %2905 = vst.msk [vmem:[%s614_s29] sm:$0xff] %vm654_vm1, %v2904_v57 }
 0xd0c   : > { %3547 = shalt.err (!%p3544_p6)
}
 0xd0d   : > { %s3548_s17 = scalar_lea.hbm %s4230_s30, 128  ;;  %s3552_s16 = scalar_lea.hbm %s4340_s0, 256 }
 0xd0e   : > { %p3549_p7 = scmp.ne.s32.totalorder %s4230_s30, %s3548_s17  ;;  %p3553_p4 = scmp.lt.u32.totalorder %s4230_s30, %s4340_s0 }
 0xd0f   : > { %p3554_p8 = scmp.lt.u32.totalorder %s3552_s16, %s3548_s17  ;;  %p3556_p1 = scmp.lt.u32.totalorder %s3548_s17, %s4230_s30 }
 0xd10   : > { %p3550_p9 = pnand %p3549_p7, %p4341_p10 }
 0xd11   : > { %p3555_p13 = por %p3554_p8, %p3553_p4 }
 0xd12   : > { %p3551_p12 = pneg %p3550_p9 }
 0xd13   : > { %p3557_p11 = por %p3556_p1, %p3555_p13 }
 0xd15   : > { %p3558_p0 = pnand %p3557_p11, %p3551_p12 }
 0xd17   : > { %3561 = shalt.err (!%p3558_p0)
}
 0xd18   : > { %3261 = dma.vmem_to_hbm [thread:$0]  (%p4341_p10), %s4232_s20, 128, %s4230_s30, %s2907_s19  }
 0xd19 PF: > { %s4342_s29 = sld [smem:[#allocation20_spill]]  ;;  %s4343_s28 = sld [smem:[#allocation16_spill]] }
 0xd1a   : > { %s4344_s21 = sld [smem:[#allocation23_spill]] }
 0xd1f   : > { %p3293_p2 = scmp.ge.s32.totalorder %s4342_s29, 2  ;;  %s2933_s25 = sand.u32 1, %s4343_s28  }
 0xd20   : > { %p4345_p3 = scmp.ne.s32.totalorder %s4344_s21, 0  ;;  %s2934_s24 = scalar_lea.sflag [#allocation4], %s2933_s25 }
 0xd22   : > { %p3280_p5 = pnand %p3293_p2, %p4345_p3 }
 0xd24   : > { %3599 = dma.done.wait (!%p3280_p5), %s2934_s24, 128  }
 0xd25   : > { %3601 = vsyncadd (!%p3280_p5), %s2934_s24, 4294967168  ;;  %s32_s26 = sadd.s32 1, %s4342_s29   ;;  %s4346_s21 = sld [smem:[#allocation17_spill]] }
 0xd26   : > { %p29_p6 = scmp.ge.s32.totalorder %s32_s26, 4   ;;  %s4347_s22 = sld [smem:[#allocation18_spill]] }
 0xd27   : > { %s4348_s23 = sld [smem:[#allocation24_spill]]  ;;  %s4349_s24 = sld [smem:[#allocation19_spill]] }
 0xd28   : > { %s4350_s25 = sld [smem:[#allocation21_spill]]  ;;  %31 = sbr.rel (!%p29_p6) target bundleno = 12 (0xc), region = 143 }
 0xd2f   :  { %2939 = vsyncpa [#allocation3], 1 }
 0xd30   :  { %2941 = vsyncpa [#allocation3 + $0x1], 1 }
 0xd31   :  { %2942 = vsyncpa [#allocation6], 1 }
 0xd32   :  { %2943 = vsyncpa [#allocation9], 1 }
 0xd33   :  { %2944 = vsyncpa [#allocation4], 1 }
 0xd34   :  { %2946 = vsyncpa [#allocation4 + $0x1], 1 }

</bundles_post_ra>
